<compile_context>
chip_gen: v6e
topology: v6e:2x2x1
jax: 0.10.0
libtpu: 0.0.40
codegen_flags: <defaults>
</compile_context>

<pallas_src>
import jax
import jax.numpy as jnp
from jax import lax
from jax.experimental import pallas as pl
from jax.experimental.pallas import tpu as pltpu


def bilstm_kernel(tokf_ref, tokr_ref, gsel_ref, b_ref, whh_ref,
                  fcw_ref, fcb_ref, out_ref):
    """Fused BiLSTM forward.

    tokf_ref: (T*Bp, 1) int32  time-major token ids (forward time order)
    tokr_ref: (T*Bp, 1) int32  token ids in reversed time order, offset by Vp
    gsel_ref: (2*Vp, 8*Hp) f32 direction-masked embed@W_ih table
    b_ref:    (1, 8*Hp) f32    combined (b_ih + b_hh) biases
    whh_ref:  (2*Hp, 8*Hp) bf16 block-diagonal fused recurrent weights
    fcw_ref:  (2*Hp, Lp) bf16, fcb_ref: (1, Lp) f32 (padded lanes = -1e30)
    out_ref:  (Bp, Lp) f32     softmax probabilities (padded lanes ~ 0)

    8*Hp gate-column order: [i_f,i_r | f_f,f_r | o_f,o_r | g_f,g_r].
    """
    TBp = tokf_ref.shape[0]
    Vp2 = gsel_ref.shape[0]          # 2 * Vp
    H8 = gsel_ref.shape[1]           # 8 * Hp
    Hp = H8 // 8
    H2 = 2 * Hp
    Bp = out_ref.shape[0]
    T = TBp // Bp

    # ---- fused embedding lookup + input projection + fwd/rev selection:
    # a single one-hot matmul against the precomputed, direction-masked table.
    # Done once, off the serialized recurrence path.
    col = lax.broadcasted_iota(jnp.int32, (TBp, Vp2), 1)
    oneh = jnp.logical_or(col == tokf_ref[...],
                          col == tokr_ref[...]).astype(jnp.float32)
    gx_sel = jnp.dot(oneh, gsel_ref[...],
                     preferred_element_type=jnp.float32) + b_ref[...]  # (T*Bp, 8Hp)

    whh = whh_ref[...]                                                 # (2Hp, 8Hp) bf16

    h = jnp.zeros((Bp, H2), jnp.float32)      # [h_f | h_r]
    c = jnp.zeros((Bp, H2), jnp.float32)      # [c_f | c_r]

    # Fully unrolled time loop: per step one fused recurrent matmul, one wide
    # sigmoid and one tanh.  All slices are (8,128)-tile aligned.
    for t in range(T):
        gates = gx_sel[t * Bp:(t + 1) * Bp, :] + jnp.dot(
            h.astype(whh.dtype), whh, preferred_element_type=jnp.float32)
        sig = jax.nn.sigmoid(gates[:, 0:6 * Hp])      # [i_f,i_r,f_f,f_r,o_f,o_r]
        g = jnp.tanh(gates[:, 6 * Hp:8 * Hp])         # [g_f, g_r]
        i = sig[:, 0:H2]
        f = sig[:, H2:2 * H2]
        o = sig[:, 2 * H2:3 * H2]
        c = f * c + i * g                             # (Bp, 2Hp) f32
        h = o * jnp.tanh(c)

    # h == cat(h_fwd_final, h_bwd_final, dim=1) in PyTorch order already
    # (padded hidden lanes are exactly 0 and have zero fc rows).
    logits = (jnp.dot(h.astype(fcw_ref.dtype), fcw_ref[...],
                      preferred_element_type=jnp.float32) + fcb_ref[...])
    m = jnp.max(logits, axis=1, keepdims=True)
    e = jnp.exp(logits - m)
    s = jnp.sum(e, axis=1, keepdims=True)
    out_ref[...] = (e * pl.reciprocal(s, approx=True)).astype(out_ref.dtype)


@jax.jit
def bilstm_forward(tokens, g_sel, b_all, whh_block, fc_w_pad, fc_b_pad):
    """tokens: (B, T) int32.  Returns padded probs (Bp, Lp); slice outside."""
    B, T = tokens.shape
    Bp = -(-B // 8) * 8                 # pad batch to the f32 sublane count
    Vp = g_sel.shape[0] // 2
    Lp = fc_b_pad.shape[1]

    # Tiny token-index prep (a few hundred bytes of int32; no embedded-sequence
    # HBM round trip).  Time-major, forward and reversed orders.
    tok_p = jnp.pad(tokens, ((0, Bp - B), (0, 0)))              # (Bp, T)
    tok_tm = tok_p.T                                            # (T, Bp)
    tok_f = tok_tm.reshape(T * Bp, 1).astype(jnp.int32)
    tok_r = (tok_tm[::-1].reshape(T * Bp, 1) + Vp).astype(jnp.int32)

    vmem = pl.BlockSpec(memory_space=pltpu.MemorySpace.VMEM)
    return pl.pallas_call(
        bilstm_kernel,
        out_shape=jax.ShapeDtypeStruct((Bp, Lp), jnp.float32),
        in_specs=[vmem] * 7,
        out_specs=vmem,
    )(tok_f, tok_r,
      g_sel, b_all,
      whh_block.astype(jnp.bfloat16),
      fc_w_pad.astype(jnp.bfloat16),
      fc_b_pad)


# ---------------- parameter construction (PyTorch-layout -> kernel layout) ---

def init_raw_params(key, vocab_size, embed_dim, hidden_size, num_labels):
    """Deterministic synthetic parameters in native PyTorch nn.LSTM shapes."""
    ks = jax.random.split(key, 12)
    s = 0.1
    H = hidden_size

    def rnd(k, shape):
        return jax.random.normal(k, shape, dtype=jnp.float32) * s

    return dict(
        embed=rnd(ks[0], (vocab_size, embed_dim)),
        w_ih_f=rnd(ks[1], (4 * H, embed_dim)),   # gate rows: [i, f, g, o]
        w_hh_f=rnd(ks[2], (4 * H, H)),
        b_ih_f=rnd(ks[3], (4 * H,)),
        b_hh_f=rnd(ks[4], (4 * H,)),
        w_ih_r=rnd(ks[5], (4 * H, embed_dim)),
        w_hh_r=rnd(ks[6], (4 * H, H)),
        b_ih_r=rnd(ks[7], (4 * H,)),
        b_hh_r=rnd(ks[8], (4 * H,)),
        fc_w=rnd(ks[9], (num_labels, 2 * H)),
        fc_b=rnd(ks[10], (num_labels,)),
    )


def _gate_slices(w_t, H):
    """Split the trailing 4H axis (PyTorch gate order [i, f, g, o])."""
    return dict(i=w_t[..., 0:H], f=w_t[..., H:2 * H],
                g=w_t[..., 2 * H:3 * H], o=w_t[..., 3 * H:4 * H])


def pack_params(p, H):
    """Repack to the fused / padded / gate-major-interleaved kernel layout.

    Hidden is zero-padded H -> Hp (multiple of 64 so 2*Hp is 128-lane aligned),
    vocab -> Vp (so 2*Vp is 128-lane aligned), labels -> Lp=128.  Zero padding
    is inert: padded gates give i*g = 0 and f*c = 0, so padded c/h stay 0; the
    padded fc columns carry a -1e30 bias so they vanish in the softmax.
    """
    V, E = p['embed'].shape
    L = p['fc_w'].shape[0]
    Hp = -(-H // 64) * 64
    Vp = -(-V // 64) * 64
    Lp = -(-L // 128) * 128

    def pad_cols(w):                      # (X, H) -> (X, Hp)
        return jnp.pad(w, ((0, 0), (0, Hp - H)))

    # Input weights, both directions, gate-major / direction-interleaved cols.
    gf = _gate_slices(p['w_ih_f'].T, H)
    gr = _gate_slices(p['w_ih_r'].T, H)
    wih_all = jnp.concatenate(
        [pad_cols(b) for b in (gf['i'], gr['i'], gf['f'], gr['f'],
                               gf['o'], gr['o'], gf['g'], gr['g'])], axis=1)  # (E, 8Hp)

    # Combined biases, same column order.
    bf = _gate_slices(p['b_ih_f'] + p['b_hh_f'], H)
    br = _gate_slices(p['b_ih_r'] + p['b_hh_r'], H)
    b_all = jnp.concatenate(
        [jnp.pad(b, (0, Hp - H)) for b in (bf['i'], br['i'], bf['f'], br['f'],
                                           bf['o'], br['o'], bf['g'], br['g'])]
    )[None, :]                                                              # (1, 8Hp)

    # Precomputed embedding x input-projection table, direction-masked halves.
    G = jnp.pad(p['embed'], ((0, Vp - V), (0, 0))) @ wih_all                # (Vp, 8Hp)
    colblk = (jnp.arange(8 * Hp) // Hp) % 2                                 # 0=fwd, 1=rev
    g_sel = jnp.concatenate([G * (colblk == 0), G * (colblk == 1)], axis=0)  # (2Vp, 8Hp)

    # Block-diagonal fused recurrent weights, padded.
    hf = _gate_slices(p['w_hh_f'].T, H)
    hr = _gate_slices(p['w_hh_r'].T, H)

    def pad_hh(w):                        # (H, H) -> (Hp, Hp)
        return jnp.pad(w, ((0, Hp - H), (0, Hp - H)))

    z = jnp.zeros((Hp, Hp), jnp.float32)
    row_f = jnp.concatenate([pad_hh(hf['i']), z, pad_hh(hf['f']), z,
                             pad_hh(hf['o']), z, pad_hh(hf['g']), z], axis=1)
    row_r = jnp.concatenate([z, pad_hh(hr['i']), z, pad_hh(hr['f']),
                             z, pad_hh(hr['o']), z, pad_hh(hr['g'])], axis=1)
    whh_block = jnp.concatenate([row_f, row_r], axis=0)                     # (2Hp, 8Hp)

    # FC: (L, 2H) -> (2Hp, Lp); rows [fwd H | pad | rev H | pad], cols [L | pad].
    fw = p['fc_w'].T                                                        # (2H, L)
    fc_w_pad = jnp.zeros((2 * Hp, Lp), jnp.float32)
    fc_w_pad = fc_w_pad.at[0:H, 0:L].set(fw[0:H])
    fc_w_pad = fc_w_pad.at[Hp:Hp + H, 0:L].set(fw[H:2 * H])
    fc_b_pad = jnp.full((1, Lp), -1e30, jnp.float32)   # padded logits -> exp()=0
    fc_b_pad = fc_b_pad.at[0, 0:L].set(p['fc_b'])

    return dict(g_sel=g_sel, b_all=b_all, whh_block=whh_block,
                fc_w_pad=fc_w_pad, fc_b_pad=fc_b_pad)


# ---------------- pure-JAX reference (PyTorch semantics, f32) ----------------

def reference_forward(tokens, p):
    x = p['embed'][tokens]                      # (B, T, E)
    B, T, _ = x.shape
    H = p['w_hh_f'].shape[1]

    def cell(x_t, h, c, w_ih, w_hh, b_ih, b_hh):
        gates = x_t @ w_ih.T + b_ih + h @ w_hh.T + b_hh
        i = jax.nn.sigmoid(gates[:, 0:H])
        f = jax.nn.sigmoid(gates[:, H:2 * H])
        g = jnp.tanh(gates[:, 2 * H:3 * H])
        o = jax.nn.sigmoid(gates[:, 3 * H:4 * H])
        c = f * c + i * g
        return o * jnp.tanh(c), c

    hf = jnp.zeros((B, H)); cf = jnp.zeros((B, H))
    hr = jnp.zeros((B, H)); cr = jnp.zeros((B, H))
    for t in range(T):
        hf, cf = cell(x[:, t], hf, cf, p['w_ih_f'], p['w_hh_f'],
                      p['b_ih_f'], p['b_hh_f'])
        hr, cr = cell(x[:, T - 1 - t], hr, cr, p['w_ih_r'], p['w_hh_r'],
                      p['b_ih_r'], p['b_hh_r'])
    h_cat = jnp.concatenate([hf, hr], axis=1)
    logits = h_cat @ p['fc_w'].T + p['fc_b']
    return jax.nn.softmax(logits, axis=1)


if __name__ == "__main__":
    # Small config implied by the module: token ids (B, T) -> probs (B, labels)
    B, T = 2, 8
    vocab_size = 20
    embed_dim = 32          # O_CONFIG['embed_dim']
    hidden_size = 32        # O_CONFIG['lstm_hidden_size']
    num_labels = 4          # O_CONFIG['num_labels']
    # layer_num = 1 (forward only uses h_n[0], h_n[1] == layer-0 fwd/bwd states)

    key = jax.random.PRNGKey(0)
    k_tok, k_par = jax.random.split(key)
    tokens = jax.random.randint(k_tok, (B, T), 0, vocab_size, dtype=jnp.int32)

    raw = init_raw_params(k_par, vocab_size, embed_dim, hidden_size, num_labels)
    packed = pack_params(raw, hidden_size)

    out_pad = bilstm_forward(tokens, packed['g_sel'], packed['b_all'],
                             packed['whh_block'], packed['fc_w_pad'],
                             packed['fc_b_pad'])
    out_pad = jax.block_until_ready(out_pad)
    out = out_pad[:B, :num_labels]

    ref = reference_forward(tokens, raw)

    assert out.shape == (B, num_labels)
    assert bool(jnp.all(jnp.isfinite(out)))
    # rows of a softmax sum to 1 (approx-reciprocal tolerance)
    assert bool(jnp.allclose(jnp.sum(out, axis=1), 1.0, atol=2e-3))
    # matches the f32 reference within bf16-matmul tolerance
    max_diff = float(jnp.max(jnp.abs(out - ref)))
    assert max_diff < 2e-3, f"max diff vs reference: {max_diff}"
    print("KERNEL_OK")
</pallas_src>

<mosaic_0001>
module attributes {stable_mosaic.version = 11 : i64} {
  func.func @bilstm_kernel(%arg0: memref<64x1xi32, #tpu.memory_space<vmem>>, %arg1: memref<64x1xi32, #tpu.memory_space<vmem>>, %arg2: memref<128x512xf32, #tpu.memory_space<vmem>>, %arg3: memref<1x512xf32, #tpu.memory_space<vmem>>, %arg4: memref<128x512xbf16, #tpu.memory_space<vmem>>, %arg5: memref<128x128xbf16, #tpu.memory_space<vmem>>, %arg6: memref<1x128xf32, #tpu.memory_space<vmem>>, %arg7: memref<8x128xf32, #tpu.memory_space<vmem>>) attributes {dimension_semantics = [], scalar_prefetch = 0 : i64, scratch_operands = 0 : i64, tpu.core_type = #tpu.core_type<tc>} {
    %0 = tpu.iota {dimensions = array<i32: 1>} : vector<64x128xi32>
    %c0 = arith.constant 0 : index
    %c0_0 = arith.constant 0 : index
    %1 = vector.load %arg0[%c0, %c0_0] : memref<64x1xi32, #tpu.memory_space<vmem>>, vector<64x1xi32>
    %2 = vector.broadcast %1 : vector<64x1xi32> to vector<64x128xi32>
    %3 = arith.cmpi eq, %0, %2 : vector<64x128xi32>
    %c0_1 = arith.constant 0 : index
    %c0_2 = arith.constant 0 : index
    %4 = vector.load %arg1[%c0_1, %c0_2] : memref<64x1xi32, #tpu.memory_space<vmem>>, vector<64x1xi32>
    %5 = vector.broadcast %4 : vector<64x1xi32> to vector<64x128xi32>
    %6 = arith.cmpi eq, %0, %5 : vector<64x128xi32>
    %7 = arith.ori %3, %6 : vector<64x128xi1>
    %8 = arith.extui %7 : vector<64x128xi1> to vector<64x128xi32>
    %9 = arith.sitofp %8 : vector<64x128xi32> to vector<64x128xf32>
    %c0_3 = arith.constant 0 : index
    %c0_4 = arith.constant 0 : index
    %10 = vector.load %arg2[%c0_3, %c0_4] : memref<128x512xf32, #tpu.memory_space<vmem>>, vector<128x512xf32>
    %cst = arith.constant dense<0.000000e+00> : vector<64x512xf32>
    %11 = tpu.matmul %9, %10, %cst {dimension_numbers = #tpu.dot_dimension_numbers<[1], [0], [0], [1], [0, 0, 1, 1], [], []>} : vector<64x128xf32>, vector<128x512xf32>, vector<64x512xf32> -> vector<64x512xf32>
    %c0_5 = arith.constant 0 : index
    %c0_6 = arith.constant 0 : index
    %12 = vector.load %arg3[%c0_5, %c0_6] : memref<1x512xf32, #tpu.memory_space<vmem>>, vector<1x512xf32>
    %13 = vector.broadcast %12 : vector<1x512xf32> to vector<64x512xf32>
    %14 = arith.addf %11, %13 : vector<64x512xf32>
    %c0_7 = arith.constant 0 : index
    %c0_8 = arith.constant 0 : index
    %15 = vector.load %arg4[%c0_7, %c0_8] : memref<128x512xbf16, #tpu.memory_space<vmem>>, vector<128x512xbf16>
    %cst_9 = arith.constant 0.000000e+00 : f32
    %16 = vector.broadcast %cst_9 : f32 to vector<8x128xf32>
    %cst_10 = arith.constant 0.000000e+00 : f32
    %17 = vector.broadcast %cst_10 : f32 to vector<8x128xf32>
    %18 = vector.extract_strided_slice %14 {offsets = [0, 0], sizes = [8, 512], strides = [1, 1]} : vector<64x512xf32> to vector<8x512xf32>
    %19 = arith.truncf %16 : vector<8x128xf32> to vector<8x128xbf16>
    %cst_11 = arith.constant dense<0.000000e+00> : vector<8x512xf32>
    %20 = tpu.matmul %19, %15, %cst_11 {dimension_numbers = #tpu.dot_dimension_numbers<[1], [0], [0], [1], [0, 0, 1, 1], [], []>} : vector<8x128xbf16>, vector<128x512xbf16>, vector<8x512xf32> -> vector<8x512xf32>
    %21 = arith.addf %18, %20 : vector<8x512xf32>
    %22 = vector.extract_strided_slice %21 {offsets = [0, 0], sizes = [8, 384], strides = [1, 1]} : vector<8x512xf32> to vector<8x384xf32>
    %23 = arith.negf %22 : vector<8x384xf32>
    %24 = math.exp %23 : vector<8x384xf32>
    %cst_12 = arith.constant 1.000000e+00 : f32
    %25 = vector.broadcast %cst_12 : f32 to vector<8x384xf32>
    %26 = arith.addf %25, %24 : vector<8x384xf32>
    %27 = arith.divf %25, %26 : vector<8x384xf32>
    %28 = vector.extract_strided_slice %21 {offsets = [0, 384], sizes = [8, 128], strides = [1, 1]} : vector<8x512xf32> to vector<8x128xf32>
    %29 = math.tanh %28 : vector<8x128xf32>
    %30 = vector.extract_strided_slice %27 {offsets = [0, 0], sizes = [8, 128], strides = [1, 1]} : vector<8x384xf32> to vector<8x128xf32>
    %31 = vector.extract_strided_slice %27 {offsets = [0, 128], sizes = [8, 128], strides = [1, 1]} : vector<8x384xf32> to vector<8x128xf32>
    %32 = vector.extract_strided_slice %27 {offsets = [0, 256], sizes = [8, 128], strides = [1, 1]} : vector<8x384xf32> to vector<8x128xf32>
    %33 = arith.mulf %31, %17 : vector<8x128xf32>
    %34 = arith.mulf %30, %29 : vector<8x128xf32>
    %35 = arith.addf %33, %34 : vector<8x128xf32>
    %36 = math.tanh %35 : vector<8x128xf32>
    %37 = arith.mulf %32, %36 : vector<8x128xf32>
    %38 = vector.extract_strided_slice %14 {offsets = [8, 0], sizes = [8, 512], strides = [1, 1]} : vector<64x512xf32> to vector<8x512xf32>
    %39 = arith.truncf %37 : vector<8x128xf32> to vector<8x128xbf16>
    %cst_13 = arith.constant dense<0.000000e+00> : vector<8x512xf32>
    %40 = tpu.matmul %39, %15, %cst_13 {dimension_numbers = #tpu.dot_dimension_numbers<[1], [0], [0], [1], [0, 0, 1, 1], [], []>} : vector<8x128xbf16>, vector<128x512xbf16>, vector<8x512xf32> -> vector<8x512xf32>
    %41 = arith.addf %38, %40 : vector<8x512xf32>
    %42 = vector.extract_strided_slice %41 {offsets = [0, 0], sizes = [8, 384], strides = [1, 1]} : vector<8x512xf32> to vector<8x384xf32>
    %43 = arith.negf %42 : vector<8x384xf32>
    %44 = math.exp %43 : vector<8x384xf32>
    %cst_14 = arith.constant 1.000000e+00 : f32
    %45 = vector.broadcast %cst_14 : f32 to vector<8x384xf32>
    %46 = arith.addf %45, %44 : vector<8x384xf32>
    %47 = arith.divf %45, %46 : vector<8x384xf32>
    %48 = vector.extract_strided_slice %41 {offsets = [0, 384], sizes = [8, 128], strides = [1, 1]} : vector<8x512xf32> to vector<8x128xf32>
    %49 = math.tanh %48 : vector<8x128xf32>
    %50 = vector.extract_strided_slice %47 {offsets = [0, 0], sizes = [8, 128], strides = [1, 1]} : vector<8x384xf32> to vector<8x128xf32>
    %51 = vector.extract_strided_slice %47 {offsets = [0, 128], sizes = [8, 128], strides = [1, 1]} : vector<8x384xf32> to vector<8x128xf32>
    %52 = vector.extract_strided_slice %47 {offsets = [0, 256], sizes = [8, 128], strides = [1, 1]} : vector<8x384xf32> to vector<8x128xf32>
    %53 = arith.mulf %51, %35 : vector<8x128xf32>
    %54 = arith.mulf %50, %49 : vector<8x128xf32>
    %55 = arith.addf %53, %54 : vector<8x128xf32>
    %56 = math.tanh %55 : vector<8x128xf32>
    %57 = arith.mulf %52, %56 : vector<8x128xf32>
    %58 = vector.extract_strided_slice %14 {offsets = [16, 0], sizes = [8, 512], strides = [1, 1]} : vector<64x512xf32> to vector<8x512xf32>
    %59 = arith.truncf %57 : vector<8x128xf32> to vector<8x128xbf16>
    %cst_15 = arith.constant dense<0.000000e+00> : vector<8x512xf32>
    %60 = tpu.matmul %59, %15, %cst_15 {dimension_numbers = #tpu.dot_dimension_numbers<[1], [0], [0], [1], [0, 0, 1, 1], [], []>} : vector<8x128xbf16>, vector<128x512xbf16>, vector<8x512xf32> -> vector<8x512xf32>
    %61 = arith.addf %58, %60 : vector<8x512xf32>
    %62 = vector.extract_strided_slice %61 {offsets = [0, 0], sizes = [8, 384], strides = [1, 1]} : vector<8x512xf32> to vector<8x384xf32>
    %63 = arith.negf %62 : vector<8x384xf32>
    %64 = math.exp %63 : vector<8x384xf32>
    %cst_16 = arith.constant 1.000000e+00 : f32
    %65 = vector.broadcast %cst_16 : f32 to vector<8x384xf32>
    %66 = arith.addf %65, %64 : vector<8x384xf32>
    %67 = arith.divf %65, %66 : vector<8x384xf32>
    %68 = vector.extract_strided_slice %61 {offsets = [0, 384], sizes = [8, 128], strides = [1, 1]} : vector<8x512xf32> to vector<8x128xf32>
    %69 = math.tanh %68 : vector<8x128xf32>
    %70 = vector.extract_strided_slice %67 {offsets = [0, 0], sizes = [8, 128], strides = [1, 1]} : vector<8x384xf32> to vector<8x128xf32>
    %71 = vector.extract_strided_slice %67 {offsets = [0, 128], sizes = [8, 128], strides = [1, 1]} : vector<8x384xf32> to vector<8x128xf32>
    %72 = vector.extract_strided_slice %67 {offsets = [0, 256], sizes = [8, 128], strides = [1, 1]} : vector<8x384xf32> to vector<8x128xf32>
    %73 = arith.mulf %71, %55 : vector<8x128xf32>
    %74 = arith.mulf %70, %69 : vector<8x128xf32>
    %75 = arith.addf %73, %74 : vector<8x128xf32>
    %76 = math.tanh %75 : vector<8x128xf32>
    %77 = arith.mulf %72, %76 : vector<8x128xf32>
    %78 = vector.extract_strided_slice %14 {offsets = [24, 0], sizes = [8, 512], strides = [1, 1]} : vector<64x512xf32> to vector<8x512xf32>
    %79 = arith.truncf %77 : vector<8x128xf32> to vector<8x128xbf16>
    %cst_17 = arith.constant dense<0.000000e+00> : vector<8x512xf32>
    %80 = tpu.matmul %79, %15, %cst_17 {dimension_numbers = #tpu.dot_dimension_numbers<[1], [0], [0], [1], [0, 0, 1, 1], [], []>} : vector<8x128xbf16>, vector<128x512xbf16>, vector<8x512xf32> -> vector<8x512xf32>
    %81 = arith.addf %78, %80 : vector<8x512xf32>
    %82 = vector.extract_strided_slice %81 {offsets = [0, 0], sizes = [8, 384], strides = [1, 1]} : vector<8x512xf32> to vector<8x384xf32>
    %83 = arith.negf %82 : vector<8x384xf32>
    %84 = math.exp %83 : vector<8x384xf32>
    %cst_18 = arith.constant 1.000000e+00 : f32
    %85 = vector.broadcast %cst_18 : f32 to vector<8x384xf32>
    %86 = arith.addf %85, %84 : vector<8x384xf32>
    %87 = arith.divf %85, %86 : vector<8x384xf32>
    %88 = vector.extract_strided_slice %81 {offsets = [0, 384], sizes = [8, 128], strides = [1, 1]} : vector<8x512xf32> to vector<8x128xf32>
    %89 = math.tanh %88 : vector<8x128xf32>
    %90 = vector.extract_strided_slice %87 {offsets = [0, 0], sizes = [8, 128], strides = [1, 1]} : vector<8x384xf32> to vector<8x128xf32>
    %91 = vector.extract_strided_slice %87 {offsets = [0, 128], sizes = [8, 128], strides = [1, 1]} : vector<8x384xf32> to vector<8x128xf32>
    %92 = vector.extract_strided_slice %87 {offsets = [0, 256], sizes = [8, 128], strides = [1, 1]} : vector<8x384xf32> to vector<8x128xf32>
    %93 = arith.mulf %91, %75 : vector<8x128xf32>
    %94 = arith.mulf %90, %89 : vector<8x128xf32>
    %95 = arith.addf %93, %94 : vector<8x128xf32>
    %96 = math.tanh %95 : vector<8x128xf32>
    %97 = arith.mulf %92, %96 : vector<8x128xf32>
    %98 = vector.extract_strided_slice %14 {offsets = [32, 0], sizes = [8, 512], strides = [1, 1]} : vector<64x512xf32> to vector<8x512xf32>
    %99 = arith.truncf %97 : vector<8x128xf32> to vector<8x128xbf16>
    %cst_19 = arith.constant dense<0.000000e+00> : vector<8x512xf32>
    %100 = tpu.matmul %99, %15, %cst_19 {dimension_numbers = #tpu.dot_dimension_numbers<[1], [0], [0], [1], [0, 0, 1, 1], [], []>} : vector<8x128xbf16>, vector<128x512xbf16>, vector<8x512xf32> -> vector<8x512xf32>
    %101 = arith.addf %98, %100 : vector<8x512xf32>
    %102 = vector.extract_strided_slice %101 {offsets = [0, 0], sizes = [8, 384], strides = [1, 1]} : vector<8x512xf32> to vector<8x384xf32>
    %103 = arith.negf %102 : vector<8x384xf32>
    %104 = math.exp %103 : vector<8x384xf32>
    %cst_20 = arith.constant 1.000000e+00 : f32
    %105 = vector.broadcast %cst_20 : f32 to vector<8x384xf32>
    %106 = arith.addf %105, %104 : vector<8x384xf32>
    %107 = arith.divf %105, %106 : vector<8x384xf32>
    %108 = vector.extract_strided_slice %101 {offsets = [0, 384], sizes = [8, 128], strides = [1, 1]} : vector<8x512xf32> to vector<8x128xf32>
    %109 = math.tanh %108 : vector<8x128xf32>
    %110 = vector.extract_strided_slice %107 {offsets = [0, 0], sizes = [8, 128], strides = [1, 1]} : vector<8x384xf32> to vector<8x128xf32>
    %111 = vector.extract_strided_slice %107 {offsets = [0, 128], sizes = [8, 128], strides = [1, 1]} : vector<8x384xf32> to vector<8x128xf32>
    %112 = vector.extract_strided_slice %107 {offsets = [0, 256], sizes = [8, 128], strides = [1, 1]} : vector<8x384xf32> to vector<8x128xf32>
    %113 = arith.mulf %111, %95 : vector<8x128xf32>
    %114 = arith.mulf %110, %109 : vector<8x128xf32>
    %115 = arith.addf %113, %114 : vector<8x128xf32>
    %116 = math.tanh %115 : vector<8x128xf32>
    %117 = arith.mulf %112, %116 : vector<8x128xf32>
    %118 = vector.extract_strided_slice %14 {offsets = [40, 0], sizes = [8, 512], strides = [1, 1]} : vector<64x512xf32> to vector<8x512xf32>
    %119 = arith.truncf %117 : vector<8x128xf32> to vector<8x128xbf16>
    %cst_21 = arith.constant dense<0.000000e+00> : vector<8x512xf32>
    %120 = tpu.matmul %119, %15, %cst_21 {dimension_numbers = #tpu.dot_dimension_numbers<[1], [0], [0], [1], [0, 0, 1, 1], [], []>} : vector<8x128xbf16>, vector<128x512xbf16>, vector<8x512xf32> -> vector<8x512xf32>
    %121 = arith.addf %118, %120 : vector<8x512xf32>
    %122 = vector.extract_strided_slice %121 {offsets = [0, 0], sizes = [8, 384], strides = [1, 1]} : vector<8x512xf32> to vector<8x384xf32>
    %123 = arith.negf %122 : vector<8x384xf32>
    %124 = math.exp %123 : vector<8x384xf32>
    %cst_22 = arith.constant 1.000000e+00 : f32
    %125 = vector.broadcast %cst_22 : f32 to vector<8x384xf32>
    %126 = arith.addf %125, %124 : vector<8x384xf32>
    %127 = arith.divf %125, %126 : vector<8x384xf32>
    %128 = vector.extract_strided_slice %121 {offsets = [0, 384], sizes = [8, 128], strides = [1, 1]} : vector<8x512xf32> to vector<8x128xf32>
    %129 = math.tanh %128 : vector<8x128xf32>
    %130 = vector.extract_strided_slice %127 {offsets = [0, 0], sizes = [8, 128], strides = [1, 1]} : vector<8x384xf32> to vector<8x128xf32>
    %131 = vector.extract_strided_slice %127 {offsets = [0, 128], sizes = [8, 128], strides = [1, 1]} : vector<8x384xf32> to vector<8x128xf32>
    %132 = vector.extract_strided_slice %127 {offsets = [0, 256], sizes = [8, 128], strides = [1, 1]} : vector<8x384xf32> to vector<8x128xf32>
    %133 = arith.mulf %131, %115 : vector<8x128xf32>
    %134 = arith.mulf %130, %129 : vector<8x128xf32>
    %135 = arith.addf %133, %134 : vector<8x128xf32>
    %136 = math.tanh %135 : vector<8x128xf32>
    %137 = arith.mulf %132, %136 : vector<8x128xf32>
    %138 = vector.extract_strided_slice %14 {offsets = [48, 0], sizes = [8, 512], strides = [1, 1]} : vector<64x512xf32> to vector<8x512xf32>
    %139 = arith.truncf %137 : vector<8x128xf32> to vector<8x128xbf16>
    %cst_23 = arith.constant dense<0.000000e+00> : vector<8x512xf32>
    %140 = tpu.matmul %139, %15, %cst_23 {dimension_numbers = #tpu.dot_dimension_numbers<[1], [0], [0], [1], [0, 0, 1, 1], [], []>} : vector<8x128xbf16>, vector<128x512xbf16>, vector<8x512xf32> -> vector<8x512xf32>
    %141 = arith.addf %138, %140 : vector<8x512xf32>
    %142 = vector.extract_strided_slice %141 {offsets = [0, 0], sizes = [8, 384], strides = [1, 1]} : vector<8x512xf32> to vector<8x384xf32>
    %143 = arith.negf %142 : vector<8x384xf32>
    %144 = math.exp %143 : vector<8x384xf32>
    %cst_24 = arith.constant 1.000000e+00 : f32
    %145 = vector.broadcast %cst_24 : f32 to vector<8x384xf32>
    %146 = arith.addf %145, %144 : vector<8x384xf32>
    %147 = arith.divf %145, %146 : vector<8x384xf32>
    %148 = vector.extract_strided_slice %141 {offsets = [0, 384], sizes = [8, 128], strides = [1, 1]} : vector<8x512xf32> to vector<8x128xf32>
    %149 = math.tanh %148 : vector<8x128xf32>
    %150 = vector.extract_strided_slice %147 {offsets = [0, 0], sizes = [8, 128], strides = [1, 1]} : vector<8x384xf32> to vector<8x128xf32>
    %151 = vector.extract_strided_slice %147 {offsets = [0, 128], sizes = [8, 128], strides = [1, 1]} : vector<8x384xf32> to vector<8x128xf32>
    %152 = vector.extract_strided_slice %147 {offsets = [0, 256], sizes = [8, 128], strides = [1, 1]} : vector<8x384xf32> to vector<8x128xf32>
    %153 = arith.mulf %151, %135 : vector<8x128xf32>
    %154 = arith.mulf %150, %149 : vector<8x128xf32>
    %155 = arith.addf %153, %154 : vector<8x128xf32>
    %156 = math.tanh %155 : vector<8x128xf32>
    %157 = arith.mulf %152, %156 : vector<8x128xf32>
    %158 = vector.extract_strided_slice %14 {offsets = [56, 0], sizes = [8, 512], strides = [1, 1]} : vector<64x512xf32> to vector<8x512xf32>
    %159 = arith.truncf %157 : vector<8x128xf32> to vector<8x128xbf16>
    %cst_25 = arith.constant dense<0.000000e+00> : vector<8x512xf32>
    %160 = tpu.matmul %159, %15, %cst_25 {dimension_numbers = #tpu.dot_dimension_numbers<[1], [0], [0], [1], [0, 0, 1, 1], [], []>} : vector<8x128xbf16>, vector<128x512xbf16>, vector<8x512xf32> -> vector<8x512xf32>
    %161 = arith.addf %158, %160 : vector<8x512xf32>
    %162 = vector.extract_strided_slice %161 {offsets = [0, 0], sizes = [8, 384], strides = [1, 1]} : vector<8x512xf32> to vector<8x384xf32>
    %163 = arith.negf %162 : vector<8x384xf32>
    %164 = math.exp %163 : vector<8x384xf32>
    %cst_26 = arith.constant 1.000000e+00 : f32
    %165 = vector.broadcast %cst_26 : f32 to vector<8x384xf32>
    %166 = arith.addf %165, %164 : vector<8x384xf32>
    %167 = arith.divf %165, %166 : vector<8x384xf32>
    %168 = vector.extract_strided_slice %161 {offsets = [0, 384], sizes = [8, 128], strides = [1, 1]} : vector<8x512xf32> to vector<8x128xf32>
    %169 = math.tanh %168 : vector<8x128xf32>
    %170 = vector.extract_strided_slice %167 {offsets = [0, 0], sizes = [8, 128], strides = [1, 1]} : vector<8x384xf32> to vector<8x128xf32>
    %171 = vector.extract_strided_slice %167 {offsets = [0, 128], sizes = [8, 128], strides = [1, 1]} : vector<8x384xf32> to vector<8x128xf32>
    %172 = vector.extract_strided_slice %167 {offsets = [0, 256], sizes = [8, 128], strides = [1, 1]} : vector<8x384xf32> to vector<8x128xf32>
    %173 = arith.mulf %171, %155 : vector<8x128xf32>
    %174 = arith.mulf %170, %169 : vector<8x128xf32>
    %175 = arith.addf %173, %174 : vector<8x128xf32>
    %176 = math.tanh %175 : vector<8x128xf32>
    %177 = arith.mulf %172, %176 : vector<8x128xf32>
    %178 = arith.truncf %177 : vector<8x128xf32> to vector<8x128xbf16>
    %c0_27 = arith.constant 0 : index
    %c0_28 = arith.constant 0 : index
    %179 = vector.load %arg5[%c0_27, %c0_28] : memref<128x128xbf16, #tpu.memory_space<vmem>>, vector<128x128xbf16>
    %cst_29 = arith.constant dense<0.000000e+00> : vector<8x128xf32>
    %180 = tpu.matmul %178, %179, %cst_29 {dimension_numbers = #tpu.dot_dimension_numbers<[1], [0], [0], [1], [0, 0, 1, 1], [], []>} : vector<8x128xbf16>, vector<128x128xbf16>, vector<8x128xf32> -> vector<8x128xf32>
    %c0_30 = arith.constant 0 : index
    %c0_31 = arith.constant 0 : index
    %181 = vector.load %arg6[%c0_30, %c0_31] : memref<1x128xf32, #tpu.memory_space<vmem>>, vector<1x128xf32>
    %182 = vector.broadcast %181 : vector<1x128xf32> to vector<8x128xf32>
    %183 = arith.addf %180, %182 : vector<8x128xf32>
    %cst_32 = arith.constant dense<0xFF800000> : vector<8xf32>
    %184 = vector.multi_reduction <maximumf>, %183, %cst_32 [1] : vector<8x128xf32> to vector<8xf32>
    %185 = vector.shape_cast %184 : vector<8xf32> to vector<8x1xf32>
    %186 = vector.broadcast %185 : vector<8x1xf32> to vector<8x128xf32>
    %187 = arith.subf %183, %186 : vector<8x128xf32>
    %188 = math.exp %187 : vector<8x128xf32>
    %cst_33 = arith.constant dense<0.000000e+00> : vector<8xf32>
    %189 = vector.multi_reduction <add>, %188, %cst_33 [1] : vector<8x128xf32> to vector<8xf32>
    %190 = vector.shape_cast %189 : vector<8xf32> to vector<8x1xf32>
    %191 = tpu.reciprocal %190 {approx = true} : vector<8x1xf32> -> vector<8x1xf32>
    %192 = vector.broadcast %191 : vector<8x1xf32> to vector<8x128xf32>
    %193 = arith.mulf %188, %192 : vector<8x128xf32>
    %c0_34 = arith.constant 0 : index
    %c0_35 = arith.constant 0 : index
    %194 = vector.load %arg7[%c0_34, %c0_35] : memref<8x128xf32, #tpu.memory_space<vmem>>, vector<8x128xf32>
    tpu.vector_store %arg7[%c0_34, %c0_35], %193 {strides = array<i32>} : memref<8x128xf32, #tpu.memory_space<vmem>>, vector<8x128xf32>,
    return
  }
}

</mosaic_0001>

<bundles_post_ra>
// kernel: bilstm_forward.1
= control target key start
LH: loop header
LB: loop body
LE: loop exit
PB: predicated region body
PF: predicated region fallthrough
CT: control target
= control target key end

     0   :  { %v3139_v2 = vmov 0   ;;  %v3137_v5 = vmov 0.0   ;;  %s3129_s0 = inlined_call_operand.vmem [shape: s32[64,1], index: 0, kind: input, shape index: {}]   ;;  %s3130_s1 = inlined_call_operand.vmem [shape: s32[64,1], index: 1, kind: input, shape index: {}]   ;;  %s3131_s2 = inlined_call_operand.vmem [shape: f32[128,512], index: 2, kind: input, shape index: {}]   ;;  %s3132_s3 = inlined_call_operand.vmem [shape: f32[1,512], index: 3, kind: input, shape index: {}]   ;;  %s3133_s4 = inlined_call_operand.vmem [shape: bf16[128,512], index: 4, kind: input, shape index: {}]   ;;  %s3134_s5 = inlined_call_operand.vmem [shape: bf16[128,128], index: 5, kind: input, shape index: {}]   ;;  %s3135_s6 = inlined_call_operand.vmem [shape: f32[1,128], index: 6, kind: input, shape index: {}]   ;;  %s3136_s7 = inlined_call_operand.hbm [shape: f32[8,128], index: 7, kind: output, shape index: {}]  }
   0x1   :  { %v31_v0 = vld [vmem:[%s3129_s0 + $0x8] sm:$0xff]  ;;  %v30_v1 = vld [vmem:[%s3129_s0] sm:$0xff]  ;;  %1785 = vset.pattern.permute.xlu1 %v3139_v2  ;;  %1784 = vset.pattern.permute.xlu0 %v3139_v2  ;;  %v197_v8 = vld [vmem:[%s3131_s2 + $0x1f8] sm:$0xff] }
   0x2   :  { %42 = vperm.xlu1 %1785, %v31_v0   ;;  %39 = vperm.xlu0 %1784, %v30_v1   ;;  %v71_v3 = vld [vmem:[%s3130_s1 + $0x8] sm:$0xff]  ;;  %v70_v4 = vld [vmem:[%s3130_s1] sm:$0xff]  ;;  %v196_v10 = vld [vmem:[%s3131_s2 + $0x1f0] sm:$0xff] }
   0x3   :  { %284 = vmatprep.mubr.f32.mxu0 %v3137_v5  ;;  %397 = vmatprep.mubr.f32.mxu1 %v3137_v5  ;;  %v195_v6 = vld [vmem:[%s3131_s2 + $0x1e8] sm:$0xff]  ;;  %v194_v7 = vld [vmem:[%s3131_s2 + $0x1e0] sm:$0xff]  ;;  %v72_v11 = vld [vmem:[%s3130_s1 + $0x10] sm:$0xff] }
   0x4   :  { %v191_v9 = vld [vmem:[%s3131_s2 + $0x1c8] sm:$0xff]  ;;  %v32_v12 = vld [vmem:[%s3129_s0 + $0x10] sm:$0xff]  ;;  %220 = vmatprep.subr.mxu0 %v195_v6  ;;  %333 = vmatprep.subr.mxu1 %v197_v8  ;;  %v193_v13 = vld [vmem:[%s3131_s2 + $0x1d8] sm:$0xff] }
   0x5   :  { %221 = vmatpush1.msra.mxu0 %v194_v7  ;;  %334 = vmatpush1.msra.mxu1 %v196_v10  ;;  %v190_v14 = vld [vmem:[%s3131_s2 + $0x1c0] sm:$0xff]  ;;  %v192_v15 = vld [vmem:[%s3131_s2 + $0x1d0] sm:$0xff]  ;;  %v187_v16 = vld [vmem:[%s3131_s2 + $0x1a8] sm:$0xff] }
   0x6   :  { %82 = vperm.xlu1 %1785, %v71_v3   ;;  %79 = vperm.xlu0 %1784, %v70_v4   ;;  %v189_v17 = vld [vmem:[%s3131_s2 + $0x1b8] sm:$0xff]  ;;  %v186_v18 = vld [vmem:[%s3131_s2 + $0x1a0] sm:$0xff]  ;;  %v188_v19 = vld [vmem:[%s3131_s2 + $0x1b0] sm:$0xff] }
   0x7   :  { %222 = vmatprep.subr.mxu0 %v191_v9  ;;  %335 = vmatprep.subr.mxu1 %v193_v13  ;;  %v73_v20 = vld [vmem:[%s3130_s1 + $0x18] sm:$0xff]  ;;  %v183_v22 = vld [vmem:[%s3131_s2 + $0x188] sm:$0xff]  ;;  %v182_v24 = vld [vmem:[%s3131_s2 + $0x180] sm:$0xff] }
   0x8   :  { %v33_v21 = vld [vmem:[%s3129_s0 + $0x18] sm:$0xff]  ;;  %223 = vmatpush1.msra.mxu0 %v190_v14  ;;  %336 = vmatpush1.msra.mxu1 %v192_v15  ;;  %v184_v25 = vld [vmem:[%s3131_s2 + $0x190] sm:$0xff]  ;;  %v179_v26 = vld [vmem:[%s3131_s2 + $0x168] sm:$0xff] }
   0x9   :  { %224 = vmatprep.subr.mxu0 %v187_v16  ;;  %337 = vmatprep.subr.mxu1 %v189_v17  ;;  %v185_v23 = vld [vmem:[%s3131_s2 + $0x198] sm:$0xff]  ;;  %v74_v28 = vld [vmem:[%s3130_s1 + $0x20] sm:$0xff]  ;;  %v180_v31 = vld [vmem:[%s3131_s2 + $0x170] sm:$0xff] }
   0xa   :  { %85 = vperm.xlu1 %1785, %v72_v11   ;;  %45 = vperm.xlu0 %1784, %v32_v12   ;;  %v181_v27 = vld [vmem:[%s3131_s2 + $0x178] sm:$0xff]  ;;  %v34_v29 = vld [vmem:[%s3129_s0 + $0x20] sm:$0xff]  ;;  %v175_v32 = vld [vmem:[%s3131_s2 + $0x148] sm:$0xff] }
   0xb   :  { %225 = vmatpush1.msra.mxu0 %v186_v18  ;;  %338 = vmatpush1.msra.mxu1 %v188_v19  ;;  %v178_v30 = vld [vmem:[%s3131_s2 + $0x160] sm:$0xff]  ;;  %v177_v33 = vld [vmem:[%s3131_s2 + $0x158] sm:$0xff]  ;;  %v176_v35 = vld [vmem:[%s3131_s2 + $0x150] sm:$0xff] }
   0xc   :  { %226 = vmatprep.subr.mxu0 %v183_v22  ;;  %339 = vmatprep.subr.mxu1 %v185_v23  ;;  %v174_v34 = vld [vmem:[%s3131_s2 + $0x140] sm:$0xff]  ;;  %v75_v36 = vld [vmem:[%s3130_s1 + $0x28] sm:$0xff]  ;;  %v173_v39 = vld [vmem:[%s3131_s2 + $0x138] sm:$0xff] }
   0xd   :  { %227 = vmatpush1.msra.mxu0 %v182_v24  ;;  %340 = vmatpush1.msra.mxu1 %v184_v25  ;;  %v35_v37 = vld [vmem:[%s3129_s0 + $0x28] sm:$0xff]  ;;  %v170_v40 = vld [vmem:[%s3131_s2 + $0x120] sm:$0xff]  ;;  %v172_v41 = vld [vmem:[%s3131_s2 + $0x130] sm:$0xff] }
   0xe   :  { %88 = vperm.xlu1 %1785, %v73_v20   ;;  %48 = vperm.xlu0 %1784, %v33_v21   ;;  %v171_v38 = vld [vmem:[%s3131_s2 + $0x128] sm:$0xff]  ;;  %v169_v43 = vld [vmem:[%s3131_s2 + $0x118] sm:$0xff]  ;;  %v76_v44 = vld [vmem:[%s3130_s1 + $0x30] sm:$0xff] }
   0xf   :  { %228 = vmatprep.subr.mxu0 %v179_v26  ;;  %341 = vmatprep.subr.mxu1 %v181_v27  ;;  %v167_v42 = vld [vmem:[%s3131_s2 + $0x108] sm:$0xff]  ;;  %v36_v45 = vld [vmem:[%s3129_s0 + $0x30] sm:$0xff]  ;;  %v166_v46 = vld [vmem:[%s3131_s2 + $0x100] sm:$0xff] }
  0x10   :  { %229 = vmatpush1.msra.mxu0 %v178_v30  ;;  %342 = vmatpush1.msra.mxu1 %v180_v31  ;;  %v168_v47 = vld [vmem:[%s3131_s2 + $0x110] sm:$0xff]  ;;  %v77_v48 = vld [vmem:[%s3130_s1 + $0x38] sm:$0xff]  ;;  %v163_v50 = vld [vmem:[%s3131_s2 + $0xe8] sm:$0xff] }
  0x11   :  { %230 = vmatprep.subr.mxu0 %v175_v32  ;;  %343 = vmatprep.subr.mxu1 %v177_v33  ;;  %v37_v49 = vld [vmem:[%s3129_s0 + $0x38] sm:$0xff]  ;;  %v162_v51 = vld [vmem:[%s3131_s2 + $0xe0] sm:$0xff]  ;;  %v159_v53 = vld [vmem:[%s3131_s2 + $0xc8] sm:$0xff] }
  0x12   :  { %91 = vperm.xlu1 %1785, %v74_v28   ;;  %51 = vperm.xlu0 %1784, %v34_v29   ;;  %v165_v52 = vld [vmem:[%s3131_s2 + $0xf8] sm:$0xff]  ;;  %v164_v54 = vld [vmem:[%s3131_s2 + $0xf0] sm:$0xff]  ;;  %v158_v55 = vld [vmem:[%s3131_s2 + $0xc0] sm:$0xff] }
  0x13   :  { %231 = vmatpush1.msra.mxu0 %v174_v34  ;;  %344 = vmatpush1.msra.mxu1 %v176_v35  ;;  %v161_v56 = vld [vmem:[%s3131_s2 + $0xd8] sm:$0xff]  ;;  %v155_v57 = vld [vmem:[%s3131_s2 + $0xa8] sm:$0xff]  ;;  %v160_v58 = vld [vmem:[%s3131_s2 + $0xd0] sm:$0xff] }
  0x14   :  { %232 = vmatprep.subr.mxu0 %v171_v38  ;;  %345 = vmatprep.subr.mxu1 %v173_v39  ;;  %v154_v59 = vld [vmem:[%s3131_s2 + $0xa0] sm:$0xff]  ;;  %v157_v60 = vld [vmem:[%s3131_s2 + $0xb8] sm:$0xff]  ;;  %v151_v61 = vld [vmem:[%s3131_s2 + $0x88] sm:$0xff] }
  0x15   :  { %233 = vmatpush1.msra.mxu0 %v170_v40  ;;  %346 = vmatpush1.msra.mxu1 %v172_v41  ;;  %v156_v62 = vld [vmem:[%s3131_s2 + $0xb0] sm:$0xff]  ;;  %v150_v63 = vld [vmem:[%s3131_s2 + $0x80] sm:$0xff]  ;;  %v153_v0 = vld [vmem:[%s3131_s2 + $0x98] sm:$0xff] }
  0x16   :  { %94 = vperm.xlu1 %1785, %v75_v36   ;;  %54 = vperm.xlu0 %1784, %v35_v37   ;;  %v147_v1 = vld [vmem:[%s3131_s2 + $0x68] sm:$0xff]  ;;  %v152_v3 = vld [vmem:[%s3131_s2 + $0x90] sm:$0xff]  ;;  %v146_v4 = vld [vmem:[%s3131_s2 + $0x60] sm:$0xff] }
  0x17   :  { %234 = vmatprep.subr.mxu0 %v167_v42  ;;  %347 = vmatprep.subr.mxu1 %v169_v43  ;;  %v149_v6 = vld [vmem:[%s3131_s2 + $0x78] sm:$0xff]  ;;  %v143_v7 = vld [vmem:[%s3131_s2 + $0x48] sm:$0xff]  ;;  %v148_v8 = vld [vmem:[%s3131_s2 + $0x70] sm:$0xff] }
  0x18   :  { %235 = vmatpush1.msra.mxu0 %v166_v46  ;;  %348 = vmatpush1.msra.mxu1 %v168_v47  ;;  %v142_v9 = vld [vmem:[%s3131_s2 + $0x40] sm:$0xff]  ;;  %v145_v10 = vld [vmem:[%s3131_s2 + $0x58] sm:$0xff]  ;;  %v139_v11 = vld [vmem:[%s3131_s2 + $0x28] sm:$0xff] }
  0x19   :  { %236 = vmatprep.subr.mxu0 %v163_v50  ;;  %349 = vmatprep.subr.mxu1 %v165_v52  ;;  %v144_v12 = vld [vmem:[%s3131_s2 + $0x50] sm:$0xff]  ;;  %v138_v13 = vld [vmem:[%s3131_s2 + $0x20] sm:$0xff]  ;;  %v141_v14 = vld [vmem:[%s3131_s2 + $0x38] sm:$0xff] }
  0x1a   :  { %97 = vperm.xlu1 %1785, %v76_v44   ;;  %57 = vperm.xlu0 %1784, %v36_v45   ;;  %v135_v15 = vld [vmem:[%s3131_s2 + $0x8] sm:$0xff]  ;;  %v140_v16 = vld [vmem:[%s3131_s2 + $0x30] sm:$0xff]  ;;  %v134_v17 = vld [vmem:[%s3131_s2] sm:$0xff] }
  0x1b   :  { %237 = vmatpush1.msra.mxu0 %v162_v51  ;;  %350 = vmatpush1.msra.mxu1 %v164_v54  ;;  %v137_v18 = vld [vmem:[%s3131_s2 + $0x18] sm:$0xff]  ;;  %v136_v19 = vld [vmem:[%s3131_s2 + $0x10] sm:$0xff] }
  0x1c   :  { %238 = vmatprep.subr.mxu0 %v159_v53  ;;  %351 = vmatprep.subr.mxu1 %v161_v56  ;;  %v2320_v20 = vld [vmem:[%s3133_s4 + $0xe4] ss:$16 sps:$4 sm:$0xff]   ;;  %v2325_v21 = vld [vmem:[%s3133_s4 + $0xec] ss:$16 sps:$4 sm:$0xff]  }
  0x1d   :  { %239 = vmatpush1.msra.mxu0 %v158_v55  ;;  %352 = vmatpush1.msra.mxu1 %v160_v58 }
  0x1e   :  { %100 = vperm.xlu1 %1785, %v77_v48   ;;  %60 = vperm.xlu0 %1784, %v37_v49  }
  0x1f   :  { %240 = vmatprep.subr.mxu0 %v155_v57  ;;  %353 = vmatprep.subr.mxu1 %v157_v60 }
  0x20   :  { %241 = vmatpush1.msra.mxu0 %v154_v59  ;;  %354 = vmatpush1.msra.mxu1 %v156_v62 }
  0x21   :  { %242 = vmatprep.subr.mxu0 %v151_v61  ;;  %355 = vmatprep.subr.mxu1 %v153_v0 }
  0x22   :  { %243 = vmatpush1.msra.mxu0 %v150_v63  ;;  %356 = vmatpush1.msra.mxu1 %v152_v3 }
  0x23   :  { %244 = vmatprep.subr.mxu0 %v147_v1  ;;  %357 = vmatprep.subr.mxu1 %v149_v6 }
  0x24   :  { %245 = vmatpush1.msra.mxu0 %v146_v4  ;;  %358 = vmatpush1.msra.mxu1 %v148_v8 }
  0x25   :  { %246 = vmatprep.subr.mxu0 %v143_v7  ;;  %359 = vmatprep.subr.mxu1 %v145_v10 }
  0x26   :  { %247 = vmatpush1.msra.mxu0 %v142_v9  ;;  %360 = vmatpush1.msra.mxu1 %v144_v12 }
  0x27   :  { %248 = vmatprep.subr.mxu0 %v139_v11  ;;  %361 = vmatprep.subr.mxu1 %v141_v14 }
  0x28   :  { %249 = vmatpush1.msra.mxu0 %v138_v13  ;;  %362 = vmatpush1.msra.mxu1 %v140_v16 }
  0x29   :  { %250 = vmatprep.subr.mxu0 %v135_v15  ;;  %363 = vmatprep.subr.mxu1 %v137_v18 }
  0x2a   :  { %251 = vmatpush1.msra.mxu0 %v134_v17  ;;  %364 = vmatpush1.msra.mxu1 %v136_v19 }
  0x2b   :  { %638 = vmatprep.subr.bf16.mxu0 %v2320_v20  ;;  %679 = vmatprep.subr.bf16.mxu1 %v2325_v21 }
  0x2c   :  { %12 = vsyncpa [#allocation3], 0  ;;  %v28_v22 = vlaneseq  ;;  %v2336_v28 = vld [vmem:[%s3133_s4 + $0xe0] ss:$16 sps:$4 sm:$0xff]   ;;  %v2341_v29 = vld [vmem:[%s3133_s4 + $0xe8] ss:$16 sps:$4 sm:$0xff]  }
  0x2d   :  { %v2347_v30 = vld [vmem:[%s3133_s4 + $0xc4] ss:$16 sps:$4 sm:$0xff]   ;;  %v2352_v31 = vld [vmem:[%s3133_s4 + $0xcc] ss:$16 sps:$4 sm:$0xff]   ;;  %v2030_v32 = vmov 1.0   ;;  %s2032_s29 = smov [#allocation2]  }
  0x2e   :  { %v2330_v25 = vand.u32 127, %v28_v22  ;;  %v2363_v35 = vld [vmem:[%s3133_s4 + $0xc0] ss:$16 sps:$4 sm:$0xff]   ;;  %v2368_v36 = vld [vmem:[%s3133_s4 + $0xc8] ss:$16 sps:$4 sm:$0xff]   ;;  %v201_v9 = vshrl.u32 %v28_v22, 7 }
  0x2f   :  { %v2377_v37 = vld [vmem:[%s3133_s4 + $0xa4] ss:$16 sps:$4 sm:$0xff]   ;;  %v2382_v38 = vld [vmem:[%s3133_s4 + $0xac] ss:$16 sps:$4 sm:$0xff]   ;;  %v2393_v41 = vld [vmem:[%s3133_s4 + $0xa0] ss:$16 sps:$4 sm:$0xff]  }
  0x30   :  { %v2398_v42 = vld [vmem:[%s3133_s4 + $0xa8] ss:$16 sps:$4 sm:$0xff]   ;;  %v2407_v43 = vld [vmem:[%s3133_s4 + $0x84] ss:$16 sps:$4 sm:$0xff]   ;;  %v2412_v44 = vld [vmem:[%s3133_s4 + $0x8c] ss:$16 sps:$4 sm:$0xff]  }
  0x31   :  { %v2423_v47 = vld [vmem:[%s3133_s4 + $0x80] ss:$16 sps:$4 sm:$0xff]   ;;  %v2428_v48 = vld [vmem:[%s3133_s4 + $0x88] ss:$16 sps:$4 sm:$0xff]   ;;  %v2437_v49 = vld [vmem:[%s3133_s4 + $0x64] ss:$16 sps:$4 sm:$0xff]  }
  0x32   :  { %v2442_v50 = vld [vmem:[%s3133_s4 + $0x6c] ss:$16 sps:$4 sm:$0xff]   ;;  %v2453_v53 = vld [vmem:[%s3133_s4 + $0x60] ss:$16 sps:$4 sm:$0xff]   ;;  %v2458_v54 = vld [vmem:[%s3133_s4 + $0x68] ss:$16 sps:$4 sm:$0xff]  }
  0x33   :  { %v2467_v55 = vld [vmem:[%s3133_s4 + $0x44] ss:$16 sps:$4 sm:$0xff]   ;;  %v2472_v56 = vld [vmem:[%s3133_s4 + $0x4c] ss:$16 sps:$4 sm:$0xff]   ;;  %v2483_v59 = vld [vmem:[%s3133_s4 + $0x40] ss:$16 sps:$4 sm:$0xff]  }
  0x34   :  { %v2488_v60 = vld [vmem:[%s3133_s4 + $0x48] ss:$16 sps:$4 sm:$0xff]   ;;  %v2497_v61 = vld [vmem:[%s3133_s4 + $0x24] ss:$16 sps:$4 sm:$0xff]   ;;  %v2502_v62 = vld [vmem:[%s3133_s4 + $0x2c] ss:$16 sps:$4 sm:$0xff]  }
  0x35   :  { %v2513_v1 = vld [vmem:[%s3133_s4 + $0x20] ss:$16 sps:$4 sm:$0xff]   ;;  %v2518_v3 = vld [vmem:[%s3133_s4 + $0x28] ss:$16 sps:$4 sm:$0xff]   ;;  %v2527_v4 = vld [vmem:[%s3133_s4 + $0x4] ss:$16 sps:$4 sm:$0xff]  }
  0x36   :  { %v2532_v6 = vld [vmem:[%s3133_s4 + $0xc] ss:$16 sps:$4 sm:$0xff]   ;;  %v2543_v7 = vld [vmem:[%s3133_s4] ss:$16 sps:$4 sm:$0xff]   ;;  %v2548_v8 = vld [vmem:[%s3133_s4 + $0x8] ss:$16 sps:$4 sm:$0xff]  }
  0x37   :  { %v202_v10 = vsub.s32 0, %v201_v9  ;;  %v210_v11 = vsub.s32 2, %v201_v9  ;;  %v198_v12 = vld [vmem:[%s3132_s3] sm:$0xf]  ;;  %v206_v15 = vsub.s32 1, %v201_v9  ;;  %v214_v16 = vsub.s32 3, %v201_v9 }
  0x38   :  { %s1653_s3 = sshll.u32 %s2032_s29, 4  ;;  %s1654_s3 = int_to_ptr.vmem [resolvable:$true] %s1653_s3 }
  0x39   :  { %v203_v19 = vrot.slane %v198_v12, %v202_v10  ;;  %p2011_p1 = scmp.lt.s32.totalorder %s1654_s3, %s1654_s3 }
  0x7d   :  { %v43_v23 = vpop.permute.xlu1 %42  ;;  %v40_v24 = vpop.permute.xlu0 %39 }
  0x7e   :  { %vm62_vm1 = vcmp.eq.s32.totalorder %v2330_v25, %v40_v24  ;;  %vm63_vm3 = vcmp.eq.s32.totalorder %v2330_v25, %v43_v23  ;;  %v2610_v23 = vrot.slane %v198_v12, %v210_v11 }
  0x81   :  { %v83_v26 = vpop.permute.xlu1 %82  ;;  %v80_v27 = vpop.permute.xlu0 %79 }
  0x82   :  { %vm102_vm0 = vcmp.eq.s32.totalorder %v2330_v25, %v80_v27  ;;  %vm103_vm4 = vcmp.eq.s32.totalorder %v2330_v25, %v83_v26  ;;  %v2612_v26 = vrot.slane %v198_v12, %v214_v16 }
  0x83   :  { %vm110_vm2 = vmor %vm62_vm1, %vm102_vm0 }
  0x84   :  { %1669 = vmatmul.mubr.msk.f32.vlgmr.msra.gmra.mxu0 %vm110_vm2, %v2030_v32  ;;  %1677 = vmatmul.mubr.msk.f32.vlgmr.msra.gmra.mxu1 %vm110_vm2, %v2030_v32  ;;  %vm111_vm5 = vmor %vm63_vm3, %vm103_vm4 }
  0x85   :  { %v86_v33 = vpop.permute.xlu1 %85  ;;  %v46_v34 = vpop.permute.xlu0 %45  ;;  %639 = vmatpush1.bf16.msra.mxu0 %v2336_v28  ;;  %680 = vmatpush1.bf16.msra.mxu1 %v2341_v29 }
  0x86   :  { %290 = vmatprep.mubr.f32.mxu0 %v3137_v5  ;;  %403 = vmatprep.mubr.f32.mxu1 %v3137_v5  ;;  %vm104_vm6 = vcmp.eq.s32.totalorder %v2330_v25, %v86_v33  ;;  %vm64_vm7 = vcmp.eq.s32.totalorder %v2330_v25, %v46_v34 }
  0x87   :  { %640 = vmatprep.subr.bf16.mxu0 %v2347_v30  ;;  %681 = vmatprep.subr.bf16.mxu1 %v2352_v31  ;;  %vm112_vm8 = vmor %vm64_vm7, %vm104_vm6 }
  0x88   :  { %1670 = vmatmul.mubr.msk.f32.gmra.mxu0 %vm111_vm5, %v2030_v32  ;;  %1678 = vmatmul.mubr.msk.f32.gmra.mxu1 %vm111_vm5, %v2030_v32 }
  0x89   :  { %v89_v39 = vpop.permute.xlu1 %88  ;;  %v49_v40 = vpop.permute.xlu0 %48  ;;  %641 = vmatpush1.bf16.msra.mxu0 %v2363_v35  ;;  %682 = vmatpush1.bf16.msra.mxu1 %v2368_v36 }
  0x8a   :  { %296 = vmatprep.mubr.f32.mxu0 %v3137_v5  ;;  %409 = vmatprep.mubr.f32.mxu1 %v3137_v5  ;;  %vm105_vm9 = vcmp.eq.s32.totalorder %v2330_v25, %v89_v39  ;;  %vm65_vm10 = vcmp.eq.s32.totalorder %v2330_v25, %v49_v40 }
  0x8b   :  { %642 = vmatprep.subr.bf16.mxu0 %v2377_v37  ;;  %683 = vmatprep.subr.bf16.mxu1 %v2382_v38  ;;  %vm113_vm11 = vmor %vm65_vm10, %vm105_vm9 }
  0x8c   :  { %1671 = vmatmul.mubr.msk.f32.gmra.mxu0 %vm112_vm8, %v2030_v32  ;;  %1679 = vmatmul.mubr.msk.f32.gmra.mxu1 %vm112_vm8, %v2030_v32  ;;  %vm2031_vm8 = vmmov 0  }
  0x8d   :  { %v92_v45 = vpop.permute.xlu1 %91  ;;  %v52_v46 = vpop.permute.xlu0 %51  ;;  %643 = vmatpush1.bf16.msra.mxu0 %v2393_v41  ;;  %684 = vmatpush1.bf16.msra.mxu1 %v2398_v42 }
  0x8e   :  { %302 = vmatprep.mubr.f32.mxu0 %v3137_v5  ;;  %415 = vmatprep.mubr.f32.mxu1 %v3137_v5  ;;  %vm106_vm12 = vcmp.eq.s32.totalorder %v2330_v25, %v92_v45  ;;  %vm66_vm13 = vcmp.eq.s32.totalorder %v2330_v25, %v52_v46 }
  0x8f   :  { %644 = vmatprep.subr.bf16.mxu0 %v2407_v43  ;;  %685 = vmatprep.subr.bf16.mxu1 %v2412_v44  ;;  %vm114_vm14 = vmor %vm66_vm13, %vm106_vm12 }
  0x90   :  { %1672 = vmatmul.mubr.msk.f32.gmra.mxu0 %vm113_vm11, %v2030_v32  ;;  %1680 = vmatmul.mubr.msk.f32.gmra.mxu1 %vm113_vm11, %v2030_v32 }
  0x91   :  { %v95_v51 = vpop.permute.xlu1 %94  ;;  %v55_v52 = vpop.permute.xlu0 %54  ;;  %645 = vmatpush1.bf16.msra.mxu0 %v2423_v47  ;;  %686 = vmatpush1.bf16.msra.mxu1 %v2428_v48 }
  0x92   :  { %308 = vmatprep.mubr.f32.mxu0 %v3137_v5  ;;  %421 = vmatprep.mubr.f32.mxu1 %v3137_v5  ;;  %vm107_vm15 = vcmp.eq.s32.totalorder %v2330_v25, %v95_v51  ;;  %vm67_vm0 = vcmp.eq.s32.totalorder %v2330_v25, %v55_v52 }
  0x93   :  { %646 = vmatprep.subr.bf16.mxu0 %v2437_v49  ;;  %687 = vmatprep.subr.bf16.mxu1 %v2442_v50  ;;  %vm115_vm1 = vmor %vm67_vm0, %vm107_vm15 }
  0x94   :  { %1673 = vmatmul.mubr.msk.f32.gmra.mxu0 %vm114_vm14, %v2030_v32  ;;  %1681 = vmatmul.mubr.msk.f32.gmra.mxu1 %vm114_vm14, %v2030_v32 }
  0x95   :  { %v98_v57 = vpop.permute.xlu1 %97  ;;  %v58_v58 = vpop.permute.xlu0 %57  ;;  %647 = vmatpush1.bf16.msra.mxu0 %v2453_v53  ;;  %688 = vmatpush1.bf16.msra.mxu1 %v2458_v54 }
  0x96   :  { %314 = vmatprep.mubr.f32.mxu0 %v3137_v5  ;;  %427 = vmatprep.mubr.f32.mxu1 %v3137_v5  ;;  %vm108_vm2 = vcmp.eq.s32.totalorder %v2330_v25, %v98_v57  ;;  %vm68_vm3 = vcmp.eq.s32.totalorder %v2330_v25, %v58_v58 }
  0x97   :  { %648 = vmatprep.subr.bf16.mxu0 %v2467_v55  ;;  %689 = vmatprep.subr.bf16.mxu1 %v2472_v56  ;;  %vm116_vm4 = vmor %vm68_vm3, %vm108_vm2 }
  0x98   :  { %1674 = vmatmul.mubr.msk.f32.gmra.mxu0 %vm115_vm1, %v2030_v32  ;;  %1682 = vmatmul.mubr.msk.f32.gmra.mxu1 %vm115_vm1, %v2030_v32 }
  0x99   :  { %649 = vmatpush1.bf16.msra.mxu0 %v2483_v59  ;;  %v101_v63 = vpop.permute.xlu1 %100  ;;  %v61_v0 = vpop.permute.xlu0 %60  ;;  %690 = vmatpush1.bf16.msra.mxu1 %v2488_v60 }
  0x9a   :  { %320 = vmatprep.mubr.f32.mxu0 %v3137_v5  ;;  %433 = vmatprep.mubr.f32.mxu1 %v3137_v5  ;;  %vm109_vm5 = vcmp.eq.s32.totalorder %v2330_v25, %v101_v63  ;;  %vm69_vm6 = vcmp.eq.s32.totalorder %v2330_v25, %v61_v0  ;;  %v207_v25 = vrot.slane %v198_v12, %v206_v15 }
  0x9b   :  { %650 = vmatprep.subr.bf16.mxu0 %v2497_v61  ;;  %691 = vmatprep.subr.bf16.mxu1 %v2502_v62  ;;  %vm117_vm7 = vmor %vm69_vm6, %vm109_vm5 }
  0x9c   :  { %1675 = vmatmul.mubr.msk.f32.gmra.mxu0 %vm116_vm4, %v2030_v32  ;;  %1683 = vmatmul.mubr.msk.f32.gmra.mxu1 %vm116_vm4, %v2030_v32 }
  0x9d   :  { %651 = vmatpush1.bf16.msra.mxu0 %v2513_v1  ;;  %692 = vmatpush1.bf16.msra.mxu1 %v2518_v3 }
  0x9e   :  { %326 = vmatprep.mubr.f32.mxu0 %v3137_v5  ;;  %439 = vmatprep.mubr.f32.mxu1 %v3137_v5 }
  0x9f   :  { %652 = vmatprep.subr.bf16.mxu0 %v2527_v4  ;;  %693 = vmatprep.subr.bf16.mxu1 %v2532_v6 }
  0xa0   :  { %1676 = vmatmul.mubr.msk.f32.gmra.mxu0 %vm117_vm7, %v2030_v32  ;;  %1684 = vmatmul.mubr.msk.f32.gmra.mxu1 %vm117_vm7, %v2030_v32 }
  0xa1   :  { %653 = vmatpush1.bf16.msra.mxu0 %v2543_v7  ;;  %694 = vmatpush1.bf16.msra.mxu1 %v2548_v8 }
  0xa2   :  { %670 = vmatprep.mubr.bf16.mxu0 %v3139_v2  ;;  %711 = vmatprep.mubr.bf16.mxu1 %v3139_v2 }
  0xa3   :  { %749 = vmatprep.subr.bf16.mxu0 %v2320_v20  ;;  %790 = vmatprep.subr.bf16.mxu1 %v2325_v21 }
  0xa4   :  { %671 = vmatmul.mubr.bf16.vlgmr.msra.gmra.mxu0 %v3139_v2  ;;  %712 = vmatmul.mubr.bf16.vlgmr.msra.gmra.mxu1 %v3139_v2 }
  0xa5   :  { %750 = vmatpush1.bf16.msra.mxu0 %v2336_v28  ;;  %791 = vmatpush1.bf16.msra.mxu1 %v2341_v29 }
  0xa6   :  { %751 = vmatprep.subr.bf16.mxu0 %v2347_v30  ;;  %792 = vmatprep.subr.bf16.mxu1 %v2352_v31 }
  0xa7   :  { %781 = vmatprep.mubr.bf16.mxu0 %v3139_v2  ;;  %822 = vmatprep.mubr.bf16.mxu1 %v3139_v2 }
  0xa9   :  { %752 = vmatpush1.bf16.msra.mxu0 %v2363_v35  ;;  %793 = vmatpush1.bf16.msra.mxu1 %v2368_v36 }
  0xaa   :  { %753 = vmatprep.subr.bf16.mxu0 %v2377_v37  ;;  %794 = vmatprep.subr.bf16.mxu1 %v2382_v38 }
  0xad   :  { %754 = vmatpush1.bf16.msra.mxu0 %v2393_v41  ;;  %795 = vmatpush1.bf16.msra.mxu1 %v2398_v42 }
  0xae   :  { %755 = vmatprep.subr.bf16.mxu0 %v2407_v43  ;;  %796 = vmatprep.subr.bf16.mxu1 %v2412_v44 }
  0xb1   :  { %756 = vmatpush1.bf16.msra.mxu0 %v2423_v47  ;;  %797 = vmatpush1.bf16.msra.mxu1 %v2428_v48 }
  0xb2   :  { %757 = vmatprep.subr.bf16.mxu0 %v2437_v49  ;;  %798 = vmatprep.subr.bf16.mxu1 %v2442_v50 }
  0xb5   :  { %758 = vmatpush1.bf16.msra.mxu0 %v2453_v53  ;;  %799 = vmatpush1.bf16.msra.mxu1 %v2458_v54 }
  0xb6   :  { %759 = vmatprep.subr.bf16.mxu0 %v2467_v55  ;;  %800 = vmatprep.subr.bf16.mxu1 %v2472_v56 }
  0xb9   :  { %760 = vmatpush1.bf16.msra.mxu0 %v2483_v59  ;;  %801 = vmatpush1.bf16.msra.mxu1 %v2488_v60 }
  0xba   :  { %761 = vmatprep.subr.bf16.mxu0 %v2497_v61  ;;  %802 = vmatprep.subr.bf16.mxu1 %v2502_v62 }
  0xbd   :  { %762 = vmatpush1.bf16.msra.mxu0 %v2513_v1  ;;  %803 = vmatpush1.bf16.msra.mxu1 %v2518_v3 }
  0xbe   :  { %763 = vmatprep.subr.bf16.mxu0 %v2527_v4  ;;  %804 = vmatprep.subr.bf16.mxu1 %v2532_v6 }
  0xc1   :  { %764 = vmatpush1.bf16.msra.mxu0 %v2543_v7  ;;  %805 = vmatpush1.bf16.msra.mxu1 %v2548_v8 }
  0xc2   :  { %860 = vmatprep.subr.bf16.mxu0 %v2320_v20  ;;  %901 = vmatprep.subr.bf16.mxu1 %v2325_v21 }
 0x144   :  { %v2602_v13 = vpop.f32.mrf.mxu0  ;;  %v2604_v14 = vpop.f32.mrf.mxu1 }
 0x146   :  { %v2606_v17 = vpop.f32.mrf.mxu0  ;;  %v2608_v18 = vpop.f32.mrf.mxu1 }
 0x148   :  { %v292_v22 = vpop.f32.mrf.mxu0  ;;  %v405_v24 = vpop.f32.mrf.mxu1 }
 0x149   :  { %v2614_v27 = vadd.f32 %v292_v22, %v203_v19  ;;  %v2617_v32 = vadd.f32 %v405_v24, %v2610_v23 }
 0x14a   :  { %v294_v33 = vpop.f32.mrf.mxu0  ;;  %v407_v34 = vpop.f32.mrf.mxu1 }
 0x14b   :  { %v2619_v39 = vadd.f32 %v294_v33, %v207_v25  ;;  %v2622_v40 = vadd.f32 %v407_v34, %v2612_v26 }
 0x14c   :  { %v298_v45 = vpop.f32.mrf.mxu0  ;;  %v411_v46 = vpop.f32.mrf.mxu1 }
 0x14d   :  { %v2624_v51 = vadd.f32 %v298_v45, %v203_v19  ;;  %v2627_v52 = vadd.f32 %v411_v46, %v2610_v23 }
 0x14e   :  { %v300_v57 = vpop.f32.mrf.mxu0  ;;  %v413_v58 = vpop.f32.mrf.mxu1 }
 0x14f   :  { %v2629_v63 = vadd.f32 %v300_v57, %v207_v25  ;;  %v2632_v0 = vadd.f32 %v413_v58, %v2612_v26 }
 0x150   :  { %v304_v9 = vpop.f32.mrf.mxu0  ;;  %v417_v10 = vpop.f32.mrf.mxu1 }
 0x151   :  { %3141 = vst [vmem:[#allocation5_spill] sm:$0xff] %v2632_v0  ;;  %v2634_v11 = vadd.f32 %v304_v9, %v203_v19  ;;  %v2637_v12 = vadd.f32 %v417_v10, %v2610_v23 }
 0x152   :  { %v306_v15 = vpop.f32.mrf.mxu0  ;;  %v419_v16 = vpop.f32.mrf.mxu1 }
 0x153   :  { %3142 = vst [vmem:[#allocation6_spill] sm:$0xff] %v2634_v11  ;;  %3143 = vst [vmem:[#allocation7_spill] sm:$0xff] %v2637_v12  ;;  %v2639_v22 = vadd.f32 %v306_v15, %v207_v25  ;;  %v2642_v24 = vadd.f32 %v419_v16, %v2612_v26 }
 0x154   :  { %v310_v33 = vpop.f32.mrf.mxu0  ;;  %v423_v34 = vpop.f32.mrf.mxu1 }
 0x155   :  { %3144 = vst [vmem:[#allocation8_spill] sm:$0xff] %v2639_v22  ;;  %3145 = vst [vmem:[#allocation9_spill] sm:$0xff] %v2642_v24  ;;  %v2644_v45 = vadd.f32 %v310_v33, %v203_v19  ;;  %v2647_v46 = vadd.f32 %v423_v34, %v2610_v23 }
 0x156   :  { %v312_v57 = vpop.f32.mrf.mxu0  ;;  %v425_v58 = vpop.f32.mrf.mxu1 }
 0x157   :  { %3146 = vst [vmem:[#allocation10_spill] sm:$0xff] %v2644_v45  ;;  %3147 = vst [vmem:[#allocation11_spill] sm:$0xff] %v2647_v46  ;;  %v2649_v9 = vadd.f32 %v312_v57, %v207_v25  ;;  %v2652_v10 = vadd.f32 %v425_v58, %v2612_v26 }
 0x158   :  { %v316_v5 = vpop.f32.mrf.mxu0  ;;  %v429_v15 = vpop.f32.mrf.mxu1 }
 0x159   :  { %3148 = vst [vmem:[#allocation12_spill] sm:$0xff] %v2649_v9  ;;  %3149 = vst [vmem:[#allocation13_spill] sm:$0xff] %v2652_v10  ;;  %v2654_v2 = vadd.f32 %v316_v5, %v203_v19  ;;  %v2657_v16 = vadd.f32 %v429_v15, %v2610_v23 }
 0x15a   :  { %v318_v24 = vpop.f32.mrf.mxu0  ;;  %v431_v33 = vpop.f32.mrf.mxu1 }
 0x15b   :  { %3150 = vst [vmem:[#allocation14_spill] sm:$0xff] %v2654_v2  ;;  %3151 = vst [vmem:[#allocation15_spill] sm:$0xff] %v2657_v16  ;;  %v2659_v45 = vadd.f32 %v318_v24, %v207_v25  ;;  %v2662_v34 = vadd.f32 %v431_v33, %v2612_v26 }
 0x15c   :  { %v322_v46 = vpop.f32.mrf.mxu0  ;;  %v435_v57 = vpop.f32.mrf.mxu1 }
 0x15d   :  { %3152 = vst [vmem:[#allocation16_spill] sm:$0xff] %v2659_v45  ;;  %3153 = vst [vmem:[#allocation17_spill] sm:$0xff] %v2662_v34  ;;  %v2664_v9 = vadd.f32 %v322_v46, %v203_v19  ;;  %v2667_v58 = vadd.f32 %v435_v57, %v2610_v23 }
 0x15e   :  { %v324_v10 = vpop.f32.mrf.mxu0  ;;  %v437_v5 = vpop.f32.mrf.mxu1 }
 0x15f   :  { %3154 = vst [vmem:[#allocation18_spill] sm:$0xff] %v2664_v9  ;;  %3155 = vst [vmem:[#allocation19_spill] sm:$0xff] %v2667_v58  ;;  %v2669_v2 = vadd.f32 %v324_v10, %v207_v25  ;;  %v2672_v15 = vadd.f32 %v437_v5, %v2612_v26  ;;  %v287_v9 = vadd.f32 %v2602_v13, %v203_v19 }
 0x160   :  { %v328_v16 = vpop.f32.mrf.mxu0  ;;  %v441_v24 = vpop.f32.mrf.mxu1  ;;  %v289_v5 = vadd.f32 %v2606_v17, %v207_v25 }
 0x161   :  { %3156 = vst [vmem:[#allocation20_spill] sm:$0xff] %v2669_v2  ;;  %3157 = vst [vmem:[#allocation21_spill] sm:$0xff] %v2672_v15  ;;  %v2674_v45 = vadd.f32 %v328_v16, %v203_v19  ;;  %v2677_v33 = vadd.f32 %v441_v24, %v2610_v23  ;;  %v400_v19 = vadd.f32 %v2604_v14, %v2610_v23 }
 0x162   :  { %v330_v34 = vpop.f32.mrf.mxu0  ;;  %v443_v46 = vpop.f32.mrf.mxu1 }
 0x163   :  { %3158 = vst [vmem:[#allocation22_spill] sm:$0xff] %v2674_v45  ;;  %3159 = vst [vmem:[#allocation23_spill] sm:$0xff] %v2677_v33  ;;  %v2680_v57 = vadd.f32 %v330_v34, %v207_v25  ;;  %v2683_v58 = vadd.f32 %v443_v46, %v2612_v26  ;;  %v402_v46 = vadd.f32 %v2608_v18, %v2612_v26 }
 0x164   :  { %v672_v10 = vpop.f32.mrf.mxu0  ;;  %v713_v2 = vpop.f32.mrf.mxu1 }
 0x165   :  { %v720_v15 = vadd.f32 %v672_v10, %v287_v9  ;;  %v722_v34 = vadd.f32 %v713_v2, %v400_v19 }
 0x166   :  { %v674_v12 = vpop.f32.mrf.mxu0  ;;  %v715_v16 = vpop.f32.mrf.mxu1 }
 0x167   :  { %v1717_v45 = vmul.f32 -1.442695, %v720_v15  ;;  %v721_v22 = vadd.f32 %v674_v12, %v289_v5  ;;  %v1719_v17 = vmul.f32 -1.442695, %v722_v34  ;;  %v723_v9 = vadd.f32 %v715_v16, %v402_v46 }
 0x168   :  { %v676_v24 = vpop.f32.mrf.mxu0  ;;  %v717_v33 = vpop.f32.mrf.mxu1 }
 0x169   :  { %1842 = vpow2.f32 %v1717_v45  ;;  %v1718_v11 = vmul.f32 -1.442695, %v721_v22  ;;  %v3160_v24 = vmov 0  }
 0x16a   :  { %v677_v0 = vpop.f32.mrf.mxu0  ;;  %v718_v13 = vpop.f32.mrf.mxu1 }
 0x16b   :  { %1844 = vpow2.f32 %v1718_v11 }
 0x16c   :  { %1846 = vpow2.f32 %v1719_v17 }
 0x176   :  { %v1843_v25 = vpop.eup %1842 }
 0x177   :  { %v733_v10 = vadd.f32 1.0, %v1843_v25 }
 0x178   :  { %v1845_v15 = vpop.eup %1844 }
 0x179   :  { %1848 = vrcp.f32 %v733_v10  ;;  %v734_v12 = vadd.f32 1.0, %v1845_v15  ;;  %v1847_v0 = vpop.eup %1846 }
 0x17a   :  { %1850 = vtanh.f32 %v723_v9  ;;  %v735_v33 = vadd.f32 1.0, %v1847_v0 }
 0x17b   :  { %1852 = vrcp.f32 %v734_v12 }
 0x17c   :  { %1854 = vrcp.f32 %v735_v33 }
 0x186   :  { %v1849_v22 = vpop.eup %1848 }
 0x187   :  { %v1851_v11 = vpop.eup %1850 }
 0x188   :  { %v1853_v45 = vpop.eup %1852  ;;  %v744_v2 = vmul.f32 %v1851_v11, %v1849_v22 }
 0x189   :  { %v743_v14 = vmul.f32 0.0, %v1853_v45  ;;  %v1855_v18 = vpop.eup %1854 }
 0x18b   :  { %v2690_v23 = vadd.f32 %v744_v2, %v743_v14 }
 0x18d   :  { %1856 = vtanh.f32 %v2690_v23 }
 0x19a   :  { %v1857_v26 = vpop.eup %1856 }
 0x19b   :  { %v747_v5 = vmul.f32 %v1857_v26, %v1855_v18 }
 0x19d   :  { %v748_v16 = vpack.c.bf16 %v747_v5, %v747_v5 }
 0x19f   :  { %782 = vmatmul.mubr.bf16.vlgmr.msra.gmra.mxu0 %v748_v16  ;;  %823 = vmatmul.mubr.bf16.vlgmr.msra.gmra.mxu1 %v748_v16 }
 0x1a0   :  { %861 = vmatpush1.bf16.msra.mxu0 %v2336_v28  ;;  %902 = vmatpush1.bf16.msra.mxu1 %v2341_v29 }
 0x1a1   :  { %862 = vmatprep.subr.bf16.mxu0 %v2347_v30  ;;  %903 = vmatprep.subr.bf16.mxu1 %v2352_v31 }
 0x1a2   :  { %892 = vmatprep.mubr.bf16.mxu0 %v3160_v24  ;;  %933 = vmatprep.mubr.bf16.mxu1 %v3160_v24 }
 0x1a4   :  { %863 = vmatpush1.bf16.msra.mxu0 %v2363_v35  ;;  %904 = vmatpush1.bf16.msra.mxu1 %v2368_v36 }
 0x1a5   :  { %864 = vmatprep.subr.bf16.mxu0 %v2377_v37  ;;  %905 = vmatprep.subr.bf16.mxu1 %v2382_v38 }
 0x1a8   :  { %865 = vmatpush1.bf16.msra.mxu0 %v2393_v41  ;;  %906 = vmatpush1.bf16.msra.mxu1 %v2398_v42 }
 0x1a9   :  { %866 = vmatprep.subr.bf16.mxu0 %v2407_v43  ;;  %907 = vmatprep.subr.bf16.mxu1 %v2412_v44 }
 0x1ac   :  { %867 = vmatpush1.bf16.msra.mxu0 %v2423_v47  ;;  %908 = vmatpush1.bf16.msra.mxu1 %v2428_v48 }
 0x1ad   :  { %868 = vmatprep.subr.bf16.mxu0 %v2437_v49  ;;  %909 = vmatprep.subr.bf16.mxu1 %v2442_v50 }
 0x1b0   :  { %869 = vmatpush1.bf16.msra.mxu0 %v2453_v53  ;;  %910 = vmatpush1.bf16.msra.mxu1 %v2458_v54 }
 0x1b1   :  { %870 = vmatprep.subr.bf16.mxu0 %v2467_v55  ;;  %911 = vmatprep.subr.bf16.mxu1 %v2472_v56 }
 0x1b4   :  { %871 = vmatpush1.bf16.msra.mxu0 %v2483_v59  ;;  %912 = vmatpush1.bf16.msra.mxu1 %v2488_v60 }
 0x1b5   :  { %872 = vmatprep.subr.bf16.mxu0 %v2497_v61  ;;  %913 = vmatprep.subr.bf16.mxu1 %v2502_v62 }
 0x1b8   :  { %873 = vmatpush1.bf16.msra.mxu0 %v2513_v1  ;;  %914 = vmatpush1.bf16.msra.mxu1 %v2518_v3 }
 0x1b9   :  { %874 = vmatprep.subr.bf16.mxu0 %v2527_v4  ;;  %915 = vmatprep.subr.bf16.mxu1 %v2532_v6 }
 0x1bc   :  { %875 = vmatpush1.bf16.msra.mxu0 %v2543_v7  ;;  %916 = vmatpush1.bf16.msra.mxu1 %v2548_v8 }
 0x1bd   :  { %971 = vmatprep.subr.bf16.mxu0 %v2320_v20  ;;  %1012 = vmatprep.subr.bf16.mxu1 %v2325_v21 }
 0x25f   :  { %v783_v13 = vpop.f32.mrf.mxu0  ;;  %v824_v19 = vpop.f32.mrf.mxu1 }
 0x260   :  { %v831_v34 = vadd.f32 %v783_v13, %v2614_v27  ;;  %v833_v11 = vadd.f32 %v824_v19, %v2617_v32 }
 0x261   :  { %v785_v46 = vpop.f32.mrf.mxu0  ;;  %v826_v17 = vpop.f32.mrf.mxu1 }
 0x262   :  { %v1720_v25 = vmul.f32 -1.442695, %v831_v34  ;;  %v832_v9 = vadd.f32 %v785_v46, %v2619_v39  ;;  %v1722_v45 = vmul.f32 -1.442695, %v833_v11  ;;  %v834_v33 = vadd.f32 %v826_v17, %v2622_v40 }
 0x263   :  { %v787_v10 = vpop.f32.mrf.mxu0  ;;  %v828_v15 = vpop.f32.mrf.mxu1 }
 0x264   :  { %1858 = vpow2.f32 %v1720_v25  ;;  %v1721_v12 = vmul.f32 -1.442695, %v832_v9 }
 0x265   :  { %v788_v0 = vpop.f32.mrf.mxu0  ;;  %v829_v22 = vpop.f32.mrf.mxu1 }
 0x266   :  { %1860 = vpow2.f32 %v1721_v12 }
 0x267   :  { %1862 = vpow2.f32 %v1722_v45 }
 0x268   :  { %1864 = vtanh.f32 %v834_v33 }
 0x271   :  { %v1859_v14 = vpop.eup %1858 }
 0x272   :  { %v844_v2 = vadd.f32 1.0, %v1859_v14 }
 0x273   :  { %v1861_v27 = vpop.eup %1860 }
 0x274   :  { %1866 = vrcp.f32 %v844_v2  ;;  %v845_v18 = vadd.f32 1.0, %v1861_v27  ;;  %v1863_v39 = vpop.eup %1862 }
 0x275   :  { %v1865_v26 = vpop.eup %1864  ;;  %v846_v34 = vadd.f32 1.0, %v1863_v39  ;;  %v3161_v39 = vld [vmem:[#allocation5_spill] sm:$0xff] }
 0x276   :  { %1868 = vrcp.f32 %v845_v18 }
 0x277   :  { %1870 = vrcp.f32 %v846_v34 }
 0x281   :  { %v1867_v5 = vpop.eup %1866 }
 0x282   :  { %v855_v16 = vmul.f32 %v1867_v5, %v1865_v26 }
 0x283   :  { %v1869_v13 = vpop.eup %1868 }
 0x284   :  { %v854_v46 = vmul.f32 %v1869_v13, %v2690_v23  ;;  %v1871_v40 = vpop.eup %1870 }
 0x286   :  { %v2732_v32 = vadd.f32 %v855_v16, %v854_v46 }
 0x288   :  { %1872 = vtanh.f32 %v2732_v32 }
 0x295   :  { %v1873_v19 = vpop.eup %1872 }
 0x296   :  { %v858_v17 = vmul.f32 %v1873_v19, %v1871_v40 }
 0x298   :  { %v859_v25 = vpack.c.bf16 %v858_v17, %v858_v17 }
 0x29a   :  { %893 = vmatmul.mubr.bf16.vlgmr.msra.gmra.mxu0 %v859_v25  ;;  %934 = vmatmul.mubr.bf16.vlgmr.msra.gmra.mxu1 %v859_v25 }
 0x29b   :  { %972 = vmatpush1.bf16.msra.mxu0 %v2336_v28  ;;  %1013 = vmatpush1.bf16.msra.mxu1 %v2341_v29 }
 0x29c   :  { %973 = vmatprep.subr.bf16.mxu0 %v2347_v30  ;;  %1014 = vmatprep.subr.bf16.mxu1 %v2352_v31 }
 0x29d   :  { %1003 = vmatprep.mubr.bf16.mxu0 %v3160_v24  ;;  %1044 = vmatprep.mubr.bf16.mxu1 %v3160_v24 }
 0x29f   :  { %974 = vmatpush1.bf16.msra.mxu0 %v2363_v35  ;;  %1015 = vmatpush1.bf16.msra.mxu1 %v2368_v36 }
 0x2a0   :  { %975 = vmatprep.subr.bf16.mxu0 %v2377_v37  ;;  %1016 = vmatprep.subr.bf16.mxu1 %v2382_v38 }
 0x2a3   :  { %976 = vmatpush1.bf16.msra.mxu0 %v2393_v41  ;;  %1017 = vmatpush1.bf16.msra.mxu1 %v2398_v42 }
 0x2a4   :  { %977 = vmatprep.subr.bf16.mxu0 %v2407_v43  ;;  %1018 = vmatprep.subr.bf16.mxu1 %v2412_v44 }
 0x2a7   :  { %978 = vmatpush1.bf16.msra.mxu0 %v2423_v47  ;;  %1019 = vmatpush1.bf16.msra.mxu1 %v2428_v48 }
 0x2a8   :  { %979 = vmatprep.subr.bf16.mxu0 %v2437_v49  ;;  %1020 = vmatprep.subr.bf16.mxu1 %v2442_v50 }
 0x2ab   :  { %980 = vmatpush1.bf16.msra.mxu0 %v2453_v53  ;;  %1021 = vmatpush1.bf16.msra.mxu1 %v2458_v54 }
 0x2ac   :  { %981 = vmatprep.subr.bf16.mxu0 %v2467_v55  ;;  %1022 = vmatprep.subr.bf16.mxu1 %v2472_v56 }
 0x2af   :  { %982 = vmatpush1.bf16.msra.mxu0 %v2483_v59  ;;  %1023 = vmatpush1.bf16.msra.mxu1 %v2488_v60 }
 0x2b0   :  { %983 = vmatprep.subr.bf16.mxu0 %v2497_v61  ;;  %1024 = vmatprep.subr.bf16.mxu1 %v2502_v62 }
 0x2b3   :  { %984 = vmatpush1.bf16.msra.mxu0 %v2513_v1  ;;  %1025 = vmatpush1.bf16.msra.mxu1 %v2518_v3 }
 0x2b4   :  { %985 = vmatprep.subr.bf16.mxu0 %v2527_v4  ;;  %1026 = vmatprep.subr.bf16.mxu1 %v2532_v6 }
 0x2b7   :  { %986 = vmatpush1.bf16.msra.mxu0 %v2543_v7  ;;  %1027 = vmatpush1.bf16.msra.mxu1 %v2548_v8 }
 0x2b8   :  { %1082 = vmatprep.subr.bf16.mxu0 %v2320_v20  ;;  %1123 = vmatprep.subr.bf16.mxu1 %v2325_v21 }
 0x35a   :  { %v894_v23 = vpop.f32.mrf.mxu0  ;;  %v935_v9 = vpop.f32.mrf.mxu1 }
 0x35b   :  { %v942_v10 = vadd.f32 %v894_v23, %v2624_v51  ;;  %v944_v27 = vadd.f32 %v935_v9, %v2627_v52 }
 0x35c   :  { %v896_v15 = vpop.f32.mrf.mxu0  ;;  %v937_v12 = vpop.f32.mrf.mxu1 }
 0x35d   :  { %v1723_v0 = vmul.f32 -1.442695, %v942_v10  ;;  %v943_v22 = vadd.f32 %v896_v15, %v2629_v63  ;;  %v1725_v18 = vmul.f32 -1.442695, %v944_v27  ;;  %v945_v26 = vadd.f32 %v937_v12, %v3161_v39 }
 0x35e   :  { %v898_v11 = vpop.f32.mrf.mxu0  ;;  %v939_v45 = vpop.f32.mrf.mxu1 }
 0x35f   :  { %1874 = vpow2.f32 %v1723_v0  ;;  %v1724_v33 = vmul.f32 -1.442695, %v943_v22  ;;  %v3162_v0 = vld [vmem:[#allocation6_spill] sm:$0xff] }
 0x360   :  { %v899_v14 = vpop.f32.mrf.mxu0  ;;  %v940_v2 = vpop.f32.mrf.mxu1 }
 0x361   :  { %1876 = vpow2.f32 %v1724_v33  ;;  %v3163_v14 = vld [vmem:[#allocation8_spill] sm:$0xff] }
 0x362   :  { %1878 = vpow2.f32 %v1725_v18 }
 0x363   :  { %1880 = vtanh.f32 %v945_v26 }
 0x36c   :  { %v1875_v5 = vpop.eup %1874 }
 0x36d   :  { %v955_v16 = vadd.f32 1.0, %v1875_v5 }
 0x36e   :  { %v1877_v51 = vpop.eup %1876 }
 0x36f   :  { %1882 = vrcp.f32 %v955_v16  ;;  %v956_v13 = vadd.f32 1.0, %v1877_v51  ;;  %v1879_v63 = vpop.eup %1878  ;;  %v3164_v16 = vld [vmem:[#allocation7_spill] sm:$0xff] }
 0x370   :  { %v1881_v34 = vpop.eup %1880  ;;  %v957_v17 = vadd.f32 1.0, %v1879_v63 }
 0x371   :  { %1884 = vrcp.f32 %v956_v13 }
 0x372   :  { %1886 = vrcp.f32 %v957_v17 }
 0x37c   :  { %v1883_v46 = vpop.eup %1882 }
 0x37d   :  { %v966_v40 = vmul.f32 %v1883_v46, %v1881_v34 }
 0x37e   :  { %v1885_v19 = vpop.eup %1884 }
 0x37f   :  { %v965_v25 = vmul.f32 %v1885_v19, %v2732_v32  ;;  %v1887_v23 = vpop.eup %1886 }
 0x381   :  { %v2774_v52 = vadd.f32 %v966_v40, %v965_v25 }
 0x383   :  { %1888 = vtanh.f32 %v2774_v52 }
 0x390   :  { %v1889_v9 = vpop.eup %1888 }
 0x391   :  { %v969_v10 = vmul.f32 %v1889_v9, %v1887_v23 }
 0x393   :  { %v970_v15 = vpack.c.bf16 %v969_v10, %v969_v10 }
 0x395   :  { %1004 = vmatmul.mubr.bf16.vlgmr.msra.gmra.mxu0 %v970_v15  ;;  %1045 = vmatmul.mubr.bf16.vlgmr.msra.gmra.mxu1 %v970_v15 }
 0x396   :  { %1083 = vmatpush1.bf16.msra.mxu0 %v2336_v28  ;;  %1124 = vmatpush1.bf16.msra.mxu1 %v2341_v29 }
 0x397   :  { %1084 = vmatprep.subr.bf16.mxu0 %v2347_v30  ;;  %1125 = vmatprep.subr.bf16.mxu1 %v2352_v31 }
 0x398   :  { %1114 = vmatprep.mubr.bf16.mxu0 %v3160_v24  ;;  %1155 = vmatprep.mubr.bf16.mxu1 %v3160_v24 }
 0x39a   :  { %1085 = vmatpush1.bf16.msra.mxu0 %v2363_v35  ;;  %1126 = vmatpush1.bf16.msra.mxu1 %v2368_v36 }
 0x39b   :  { %1086 = vmatprep.subr.bf16.mxu0 %v2377_v37  ;;  %1127 = vmatprep.subr.bf16.mxu1 %v2382_v38 }
 0x39e   :  { %1087 = vmatpush1.bf16.msra.mxu0 %v2393_v41  ;;  %1128 = vmatpush1.bf16.msra.mxu1 %v2398_v42 }
 0x39f   :  { %1088 = vmatprep.subr.bf16.mxu0 %v2407_v43  ;;  %1129 = vmatprep.subr.bf16.mxu1 %v2412_v44 }
 0x3a2   :  { %1089 = vmatpush1.bf16.msra.mxu0 %v2423_v47  ;;  %1130 = vmatpush1.bf16.msra.mxu1 %v2428_v48 }
 0x3a3   :  { %1090 = vmatprep.subr.bf16.mxu0 %v2437_v49  ;;  %1131 = vmatprep.subr.bf16.mxu1 %v2442_v50 }
 0x3a6   :  { %1091 = vmatpush1.bf16.msra.mxu0 %v2453_v53  ;;  %1132 = vmatpush1.bf16.msra.mxu1 %v2458_v54 }
 0x3a7   :  { %1092 = vmatprep.subr.bf16.mxu0 %v2467_v55  ;;  %1133 = vmatprep.subr.bf16.mxu1 %v2472_v56 }
 0x3aa   :  { %1093 = vmatpush1.bf16.msra.mxu0 %v2483_v59  ;;  %1134 = vmatpush1.bf16.msra.mxu1 %v2488_v60 }
 0x3ab   :  { %1094 = vmatprep.subr.bf16.mxu0 %v2497_v61  ;;  %1135 = vmatprep.subr.bf16.mxu1 %v2502_v62 }
 0x3ae   :  { %1095 = vmatpush1.bf16.msra.mxu0 %v2513_v1  ;;  %1136 = vmatpush1.bf16.msra.mxu1 %v2518_v3 }
 0x3af   :  { %1096 = vmatprep.subr.bf16.mxu0 %v2527_v4  ;;  %1137 = vmatprep.subr.bf16.mxu1 %v2532_v6 }
 0x3b2   :  { %1097 = vmatpush1.bf16.msra.mxu0 %v2543_v7  ;;  %1138 = vmatpush1.bf16.msra.mxu1 %v2548_v8 }
 0x3b3   :  { %1193 = vmatprep.subr.bf16.mxu0 %v2320_v20  ;;  %1234 = vmatprep.subr.bf16.mxu1 %v2325_v21  ;;  %v3165_v21 = vld [vmem:[#allocation9_spill] sm:$0xff] }
 0x455   :  { %v1005_v32 = vpop.f32.mrf.mxu0  ;;  %v1046_v12 = vpop.f32.mrf.mxu1 }
 0x456   :  { %v1053_v22 = vadd.f32 %v1005_v32, %v3162_v0  ;;  %v1055_v20 = vadd.f32 %v1046_v12, %v3164_v16 }
 0x457   :  { %v1007_v11 = vpop.f32.mrf.mxu0  ;;  %v1048_v45 = vpop.f32.mrf.mxu1 }
 0x458   :  { %v1726_v33 = vmul.f32 -1.442695, %v1053_v22  ;;  %v1054_v2 = vadd.f32 %v1007_v11, %v3163_v14  ;;  %v1728_v51 = vmul.f32 -1.442695, %v1055_v20  ;;  %v1056_v13 = vadd.f32 %v1048_v45, %v3165_v21  ;;  %v2874_v21 = vld [vmem:[%s3133_s4 + $0xe0] ss:$16 sps:$4 sm:$0xff]  }
 0x459   :  { %v1009_v27 = vpop.f32.mrf.mxu0  ;;  %v1050_v18 = vpop.f32.mrf.mxu1 }
 0x45a   :  { %1890 = vpow2.f32 %v1726_v33  ;;  %v1727_v39 = vmul.f32 -1.442695, %v1054_v2 }
 0x45b   :  { %v1010_v26 = vpop.f32.mrf.mxu0  ;;  %v1051_v5 = vpop.f32.mrf.mxu1 }
 0x45c   :  { %1892 = vpow2.f32 %v1727_v39 }
 0x45d   :  { %1894 = vpow2.f32 %v1728_v51 }
 0x45e   :  { %1896 = vtanh.f32 %v1056_v13  ;;  %v2880_v13 = vld [vmem:[%s3133_s4 + $0xe8] ss:$16 sps:$4 sm:$0xff]  }
 0x467   :  { %v1891_v63 = vpop.eup %1890 }
 0x468   :  { %v1066_v34 = vadd.f32 1.0, %v1891_v63  ;;  %v2886_v63 = vld [vmem:[%s3133_s4 + $0xc4] ss:$16 sps:$4 sm:$0xff]  }
 0x469   :  { %v1893_v46 = vpop.eup %1892 }
 0x46a   :  { %1898 = vrcp.f32 %v1066_v34  ;;  %v1067_v40 = vadd.f32 1.0, %v1893_v46  ;;  %v1895_v19 = vpop.eup %1894  ;;  %v2892_v34 = vld [vmem:[%s3133_s4 + $0xcc] ss:$16 sps:$4 sm:$0xff]   ;;  %v2900_v46 = vld [vmem:[%s3133_s4 + $0xc0] ss:$16 sps:$4 sm:$0xff]  }
 0x46b   :  { %v1897_v17 = vpop.eup %1896  ;;  %v1068_v10 = vadd.f32 1.0, %v1895_v19  ;;  %v2912_v19 = vld [vmem:[%s3133_s4 + $0xa4] ss:$16 sps:$4 sm:$0xff]  }
 0x46c   :  { %1900 = vrcp.f32 %v1067_v40  ;;  %v2906_v40 = vld [vmem:[%s3133_s4 + $0xc8] ss:$16 sps:$4 sm:$0xff]  }
 0x46d   :  { %1902 = vrcp.f32 %v1068_v10  ;;  %v2942_v10 = vld [vmem:[%s3133_s4 + $0x8c] ss:$16 sps:$4 sm:$0xff]  }
 0x477   :  { %v1899_v25 = vpop.eup %1898 }
 0x478   :  { %v1077_v23 = vmul.f32 %v1899_v25, %v1897_v17  ;;  %v2918_v17 = vld [vmem:[%s3133_s4 + $0xac] ss:$16 sps:$4 sm:$0xff]   ;;  %v2924_v25 = vld [vmem:[%s3133_s4 + $0xa0] ss:$16 sps:$4 sm:$0xff]  }
 0x479   :  { %v1901_v9 = vpop.eup %1900 }
 0x47a   :  { %v1076_v15 = vmul.f32 %v1901_v9, %v2774_v52  ;;  %v1903_v12 = vpop.eup %1902  ;;  %v2936_v9 = vld [vmem:[%s3133_s4 + $0x84] ss:$16 sps:$4 sm:$0xff]  }
 0x47c   :  { %v2816_v32 = vadd.f32 %v1077_v23, %v1076_v15  ;;  %v2930_v23 = vld [vmem:[%s3133_s4 + $0xa8] ss:$16 sps:$4 sm:$0xff]   ;;  %v2948_v15 = vld [vmem:[%s3133_s4 + $0x80] ss:$16 sps:$4 sm:$0xff]  }
 0x47e   :  { %1904 = vtanh.f32 %v2816_v32 }
 0x48b   :  { %v1905_v0 = vpop.eup %1904 }
 0x48c   :  { %v1080_v22 = vmul.f32 %v1905_v0, %v1903_v12  ;;  %v2960_v12 = vld [vmem:[%s3133_s4 + $0x64] ss:$16 sps:$4 sm:$0xff]   ;;  %v2966_v0 = vld [vmem:[%s3133_s4 + $0x6c] ss:$16 sps:$4 sm:$0xff]  }
 0x48e   :  { %v1081_v11 = vpack.c.bf16 %v1080_v22, %v1080_v22  ;;  %v2972_v22 = vld [vmem:[%s3133_s4 + $0x60] ss:$16 sps:$4 sm:$0xff]  }
 0x490   :  { %1115 = vmatmul.mubr.bf16.vlgmr.msra.gmra.mxu0 %v1081_v11  ;;  %1156 = vmatmul.mubr.bf16.vlgmr.msra.gmra.mxu1 %v1081_v11  ;;  %v2978_v11 = vld [vmem:[%s3133_s4 + $0x68] ss:$16 sps:$4 sm:$0xff]  }
 0x491   :  { %1194 = vmatpush1.bf16.msra.mxu0 %v2336_v28  ;;  %1235 = vmatpush1.bf16.msra.mxu1 %v2341_v29  ;;  %v2854_v28 = vld [vmem:[%s3133_s4 + $0xe4] ss:$16 sps:$4 sm:$0xff]   ;;  %v2860_v29 = vld [vmem:[%s3133_s4 + $0xec] ss:$16 sps:$4 sm:$0xff]  }
 0x492   :  { %1195 = vmatprep.subr.bf16.mxu0 %v2347_v30  ;;  %1236 = vmatprep.subr.bf16.mxu1 %v2352_v31 }
 0x493   :  { %1225 = vmatprep.mubr.bf16.mxu0 %v3160_v24  ;;  %1266 = vmatprep.mubr.bf16.mxu1 %v3160_v24 }
 0x495   :  { %1196 = vmatpush1.bf16.msra.mxu0 %v2363_v35  ;;  %1237 = vmatpush1.bf16.msra.mxu1 %v2368_v36  ;;  %v3166_v35 = vld [vmem:[#allocation10_spill] sm:$0xff] }
 0x496   :  { %1197 = vmatprep.subr.bf16.mxu0 %v2377_v37  ;;  %1238 = vmatprep.subr.bf16.mxu1 %v2382_v38 }
 0x499   :  { %1198 = vmatpush1.bf16.msra.mxu0 %v2393_v41  ;;  %1239 = vmatpush1.bf16.msra.mxu1 %v2398_v42  ;;  %v3167_v42 = vld [vmem:[#allocation12_spill] sm:$0xff] }
 0x49a   :  { %1199 = vmatprep.subr.bf16.mxu0 %v2407_v43  ;;  %1240 = vmatprep.subr.bf16.mxu1 %v2412_v44 }
 0x49d   :  { %1200 = vmatpush1.bf16.msra.mxu0 %v2423_v47  ;;  %1241 = vmatpush1.bf16.msra.mxu1 %v2428_v48 }
 0x49e   :  { %1201 = vmatprep.subr.bf16.mxu0 %v2437_v49  ;;  %1242 = vmatprep.subr.bf16.mxu1 %v2442_v50 }
 0x4a1   :  { %1202 = vmatpush1.bf16.msra.mxu0 %v2453_v53  ;;  %1243 = vmatpush1.bf16.msra.mxu1 %v2458_v54  ;;  %v3168_v53 = vld [vmem:[#allocation11_spill] sm:$0xff] }
 0x4a2   :  { %1203 = vmatprep.subr.bf16.mxu0 %v2467_v55  ;;  %1244 = vmatprep.subr.bf16.mxu1 %v2472_v56  ;;  %v3169_v56 = vld [vmem:[#allocation13_spill] sm:$0xff] }
 0x4a5   :  { %1204 = vmatpush1.bf16.msra.mxu0 %v2483_v59  ;;  %1245 = vmatpush1.bf16.msra.mxu1 %v2488_v60 }
 0x4a6   :  { %1205 = vmatprep.subr.bf16.mxu0 %v2497_v61  ;;  %1246 = vmatprep.subr.bf16.mxu1 %v2502_v62 }
 0x4a9   :  { %1206 = vmatpush1.bf16.msra.mxu0 %v2513_v1  ;;  %1247 = vmatpush1.bf16.msra.mxu1 %v2518_v3 }
 0x4aa   :  { %1207 = vmatprep.subr.bf16.mxu0 %v2527_v4  ;;  %1248 = vmatprep.subr.bf16.mxu1 %v2532_v6 }
 0x4ad   :  { %1208 = vmatpush1.bf16.msra.mxu0 %v2543_v7  ;;  %1249 = vmatpush1.bf16.msra.mxu1 %v2548_v8 }
 0x4ae   :  { %1304 = vmatprep.subr.bf16.mxu0 %v2854_v28  ;;  %1345 = vmatprep.subr.bf16.mxu1 %v2860_v29 }
 0x550   :  { %v1116_v30 = vpop.f32.mrf.mxu0  ;;  %v1157_v31 = vpop.f32.mrf.mxu1 }
 0x551   :  { %v1164_v36 = vadd.f32 %v1116_v30, %v3166_v35  ;;  %v1166_v54 = vadd.f32 %v1157_v31, %v3168_v53  ;;  %v2984_v30 = vld [vmem:[%s3133_s4 + $0x44] ss:$16 sps:$4 sm:$0xff]   ;;  %v2990_v31 = vld [vmem:[%s3133_s4 + $0x4c] ss:$16 sps:$4 sm:$0xff]   ;;  %v2996_v35 = vld [vmem:[%s3133_s4 + $0x40] ss:$16 sps:$4 sm:$0xff]  }
 0x552   :  { %v1118_v37 = vpop.f32.mrf.mxu0  ;;  %v1159_v38 = vpop.f32.mrf.mxu1 }
 0x553   :  { %v1729_v41 = vmul.f32 -1.442695, %v1164_v36  ;;  %v1165_v43 = vadd.f32 %v1118_v37, %v3167_v42  ;;  %v1731_v55 = vmul.f32 -1.442695, %v1166_v54  ;;  %v1167_v59 = vadd.f32 %v1159_v38, %v3169_v56  ;;  %v3002_v36 = vld [vmem:[%s3133_s4 + $0x48] ss:$16 sps:$4 sm:$0xff]  }
 0x554   :  { %v1120_v44 = vpop.f32.mrf.mxu0  ;;  %v1161_v47 = vpop.f32.mrf.mxu1  ;;  %v3008_v37 = vld [vmem:[%s3133_s4 + $0x24] ss:$16 sps:$4 sm:$0xff]   ;;  %v3014_v38 = vld [vmem:[%s3133_s4 + $0x2c] ss:$16 sps:$4 sm:$0xff]  }
 0x555   :  { %1906 = vpow2.f32 %v1729_v41  ;;  %v1730_v48 = vmul.f32 -1.442695, %v1165_v43  ;;  %v3170_v43 = vld [vmem:[#allocation14_spill] sm:$0xff] }
 0x556   :  { %v1121_v49 = vpop.f32.mrf.mxu0  ;;  %v1162_v50 = vpop.f32.mrf.mxu1 }
 0x557   :  { %1908 = vpow2.f32 %v1730_v48 }
 0x558   :  { %1910 = vpow2.f32 %v1731_v55 }
 0x559   :  { %1912 = vtanh.f32 %v1167_v59 }
 0x562   :  { %v1907_v60 = vpop.eup %1906 }
 0x563   :  { %v1177_v61 = vadd.f32 1.0, %v1907_v60 }
 0x564   :  { %v1909_v62 = vpop.eup %1908 }
 0x565   :  { %1914 = vrcp.f32 %v1177_v61  ;;  %v1178_v52 = vadd.f32 1.0, %v1909_v62  ;;  %v1911_v45 = vpop.eup %1910 }
 0x566   :  { %v1913_v33 = vpop.eup %1912  ;;  %v1179_v18 = vadd.f32 1.0, %v1911_v45 }
 0x567   :  { %1916 = vrcp.f32 %v1178_v52 }
 0x568   :  { %1918 = vrcp.f32 %v1179_v18 }
 0x572   :  { %v1915_v14 = vpop.eup %1914 }
 0x573   :  { %v1188_v2 = vmul.f32 %v1915_v14, %v1913_v33 }
 0x574   :  { %v1917_v27 = vpop.eup %1916 }
 0x575   :  { %v1187_v39 = vmul.f32 %v1917_v27, %v2816_v32  ;;  %v1919_v5 = vpop.eup %1918  ;;  %v2954_v32 = vld [vmem:[%s3133_s4 + $0x88] ss:$16 sps:$4 sm:$0xff]  }
 0x577   :  { %v2868_v26 = vadd.f32 %v1188_v2, %v1187_v39 }
 0x579   :  { %1920 = vtanh.f32 %v2868_v26 }
 0x586   :  { %v1921_v16 = vpop.eup %1920 }
 0x587   :  { %v1191_v20 = vmul.f32 %v1921_v16, %v1919_v5 }
 0x589   :  { %v1192_v51 = vpack.c.bf16 %v1191_v20, %v1191_v20 }
 0x58b   :  { %1226 = vmatmul.mubr.bf16.vlgmr.msra.gmra.mxu0 %v1192_v51  ;;  %1267 = vmatmul.mubr.bf16.vlgmr.msra.gmra.mxu1 %v1192_v51  ;;  %v2002_v51 = vld [vmem:[%s3133_s4 + $0x4] ss:$16 sps:$4 sm:$0xff]  }
 0x58c   :  { %1305 = vmatpush1.bf16.msra.mxu0 %v2874_v21  ;;  %1346 = vmatpush1.bf16.msra.mxu1 %v2880_v13 }
 0x58d   :  { %1306 = vmatprep.subr.bf16.mxu0 %v2886_v63  ;;  %1347 = vmatprep.subr.bf16.mxu1 %v2892_v34 }
 0x58e   :  { %1336 = vmatprep.mubr.bf16.mxu0 %v3160_v24  ;;  %1377 = vmatprep.mubr.bf16.mxu1 %v3160_v24 }
 0x590   :  { %1307 = vmatpush1.bf16.msra.mxu0 %v2900_v46  ;;  %1348 = vmatpush1.bf16.msra.mxu1 %v2906_v40 }
 0x591   :  { %1308 = vmatprep.subr.bf16.mxu0 %v2912_v19  ;;  %1349 = vmatprep.subr.bf16.mxu1 %v2918_v17 }
 0x594   :  { %1309 = vmatpush1.bf16.msra.mxu0 %v2924_v25  ;;  %1350 = vmatpush1.bf16.msra.mxu1 %v2930_v23 }
 0x595   :  { %1310 = vmatprep.subr.bf16.mxu0 %v2936_v9  ;;  %1351 = vmatprep.subr.bf16.mxu1 %v2942_v10 }
 0x598   :  { %1311 = vmatpush1.bf16.msra.mxu0 %v2948_v15  ;;  %1352 = vmatpush1.bf16.msra.mxu1 %v2954_v32 }
 0x599   :  { %1312 = vmatprep.subr.bf16.mxu0 %v2960_v12  ;;  %1353 = vmatprep.subr.bf16.mxu1 %v2966_v0 }
 0x59c   :  { %1313 = vmatpush1.bf16.msra.mxu0 %v2972_v22  ;;  %1354 = vmatpush1.bf16.msra.mxu1 %v2978_v11 }
 0x59d   :  { %1314 = vmatprep.subr.bf16.mxu0 %v2984_v30  ;;  %1355 = vmatprep.subr.bf16.mxu1 %v2990_v31 }
 0x5a0   :  { %1315 = vmatpush1.bf16.msra.mxu0 %v2996_v35  ;;  %1356 = vmatpush1.bf16.msra.mxu1 %v3002_v36 }
 0x5a1   :  { %1316 = vmatprep.subr.bf16.mxu0 %v3008_v37  ;;  %1357 = vmatprep.subr.bf16.mxu1 %v3014_v38 }
 0x5a4   :  { %1317 = vmatpush1.bf16.msra.mxu0 %v2513_v1  ;;  %1358 = vmatpush1.bf16.msra.mxu1 %v2518_v3  ;;  %v3171_v3 = vld [vmem:[#allocation16_spill] sm:$0xff] }
 0x5a5   :  { %1318 = vmatprep.subr.bf16.mxu0 %v2527_v4  ;;  %1359 = vmatprep.subr.bf16.mxu1 %v2532_v6 }
 0x5a8   :  { %1319 = vmatpush1.bf16.msra.mxu0 %v2543_v7  ;;  %1360 = vmatpush1.bf16.msra.mxu1 %v2548_v8  ;;  %v3172_v8 = vld [vmem:[#allocation15_spill] sm:$0xff] }
 0x5a9   :  { %1415 = vmatprep.subr.bf16.mxu0 %v2854_v28  ;;  %1456 = vmatprep.subr.bf16.mxu1 %v2860_v29  ;;  %v3173_v29 = vld [vmem:[#allocation17_spill] sm:$0xff] }
 0x64b   :  { %v1227_v41 = vpop.f32.mrf.mxu0  ;;  %v1268_v42 = vpop.f32.mrf.mxu1 }
 0x64c   :  { %v1275_v44 = vadd.f32 %v1227_v41, %v3170_v43  ;;  %v1277_v28 = vadd.f32 %v1268_v42, %v3172_v8 }
 0x64d   :  { %v1229_v47 = vpop.f32.mrf.mxu0  ;;  %v1270_v1 = vpop.f32.mrf.mxu1 }
 0x64e   :  { %v1732_v48 = vmul.f32 -1.442695, %v1275_v44  ;;  %v1276_v49 = vadd.f32 %v1229_v47, %v3171_v3  ;;  %v1734_v54 = vmul.f32 -1.442695, %v1277_v28  ;;  %v1278_v55 = vadd.f32 %v1270_v1, %v3173_v29  ;;  %v1834_v28 = vld [vmem:[%s3134_s5 + $0x38] sm:$0xff]   ;;  %v1836_v29 = vld [vmem:[%s3134_s5 + $0x28] sm:$0xff]  }
 0x64f   :  { %v1231_v4 = vpop.f32.mrf.mxu0  ;;  %v1272_v50 = vpop.f32.mrf.mxu1 }
 0x650   :  { %1922 = vpow2.f32 %v1732_v48  ;;  %v1733_v6 = vmul.f32 -1.442695, %v1276_v49 }
 0x651   :  { %v1232_v7 = vpop.f32.mrf.mxu0  ;;  %v1273_v53 = vpop.f32.mrf.mxu1 }
 0x652   :  { %1924 = vpow2.f32 %v1733_v6 }
 0x653   :  { %1926 = vpow2.f32 %v1734_v54  ;;  %v1835_v54 = vld [vmem:[%s3134_s5 + $0x30] sm:$0xff]  }
 0x654   :  { %1928 = vtanh.f32 %v1278_v55  ;;  %v1837_v55 = vld [vmem:[%s3134_s5 + $0x20] sm:$0xff]  }
 0x65d   :  { %v1923_v56 = vpop.eup %1922 }
 0x65e   :  { %v1288_v59 = vadd.f32 1.0, %v1923_v56  ;;  %v1838_v56 = vld [vmem:[%s3134_s5 + $0x18] sm:$0xff]  }
 0x65f   :  { %v1925_v60 = vpop.eup %1924 }
 0x660   :  { %1930 = vrcp.f32 %v1288_v59  ;;  %v1289_v61 = vadd.f32 1.0, %v1925_v60  ;;  %v1927_v62 = vpop.eup %1926  ;;  %v1839_v59 = vld [vmem:[%s3134_s5 + $0x10] sm:$0xff]   ;;  %v1840_v60 = vld [vmem:[%s3134_s5 + $0x8] sm:$0xff]  }
 0x661   :  { %v1929_v52 = vpop.eup %1928  ;;  %v1290_v2 = vadd.f32 1.0, %v1927_v62 }
 0x662   :  { %1932 = vrcp.f32 %v1289_v61  ;;  %v1841_v61 = vld [vmem:[%s3134_s5] sm:$0xff]  }
 0x663   :  { %1934 = vrcp.f32 %v1290_v2 }
 0x66d   :  { %v1931_v45 = vpop.eup %1930 }
 0x66e   :  { %v1299_v33 = vmul.f32 %v1931_v45, %v1929_v52  ;;  %v3179_v45 = vld [vmem:[#allocation22_spill] sm:$0xff] }
 0x66f   :  { %v1933_v14 = vpop.eup %1932 }
 0x670   :  { %v1298_v27 = vmul.f32 %v1933_v14, %v2868_v26  ;;  %v1935_v39 = vpop.eup %1934  ;;  %v2001_v26 = vld [vmem:[%s3133_s4 + $0x28] ss:$16 sps:$4 sm:$0xff]  }
 0x672   :  { %v3030_v18 = vadd.f32 %v1299_v33, %v1298_v27 }
 0x674   :  { %1936 = vtanh.f32 %v3030_v18 }
 0x681   :  { %v1937_v5 = vpop.eup %1936 }
 0x682   :  { %v1302_v16 = vmul.f32 %v1937_v5, %v1935_v39 }
 0x684   :  { %v1303_v20 = vpack.c.bf16 %v1302_v16, %v1302_v16 }
 0x686   :  { %1337 = vmatmul.mubr.bf16.vlgmr.msra.gmra.mxu0 %v1303_v20  ;;  %1378 = vmatmul.mubr.bf16.vlgmr.msra.gmra.mxu1 %v1303_v20 }
 0x687   :  { %1416 = vmatpush1.bf16.msra.mxu0 %v2874_v21  ;;  %1457 = vmatpush1.bf16.msra.mxu1 %v2880_v13  ;;  %v2003_v21 = vld [vmem:[%s3133_s4 + $0xc] ss:$16 sps:$4 sm:$0xff]   ;;  %v2004_v13 = vld [vmem:[%s3133_s4] ss:$16 sps:$4 sm:$0xff]  }
 0x688   :  { %1417 = vmatprep.subr.bf16.mxu0 %v2886_v63  ;;  %1458 = vmatprep.subr.bf16.mxu1 %v2892_v34  ;;  %v2005_v63 = vld [vmem:[%s3133_s4 + $0x8] ss:$16 sps:$4 sm:$0xff]   ;;  %v3174_v34 = vmov 0.0  }
 0x689   :  { %1447 = vmatprep.mubr.bf16.mxu0 %v3160_v24  ;;  %1488 = vmatprep.mubr.bf16.mxu1 %v3160_v24  ;;  %v2000_v24 = vld [vmem:[%s3133_s4 + $0x20] ss:$16 sps:$4 sm:$0xff]  }
 0x68b   :  { %1418 = vmatpush1.bf16.msra.mxu0 %v2900_v46  ;;  %1459 = vmatpush1.bf16.msra.mxu1 %v2906_v40 }
 0x68c   :  { %1419 = vmatprep.subr.bf16.mxu0 %v2912_v19  ;;  %1460 = vmatprep.subr.bf16.mxu1 %v2918_v17  ;;  %v3175_v19 = vld [vmem:[#allocation18_spill] sm:$0xff] }
 0x68f   :  { %1420 = vmatpush1.bf16.msra.mxu0 %v2924_v25  ;;  %1461 = vmatpush1.bf16.msra.mxu1 %v2930_v23 }
 0x690   :  { %1421 = vmatprep.subr.bf16.mxu0 %v2936_v9  ;;  %1462 = vmatprep.subr.bf16.mxu1 %v2942_v10  ;;  %v3176_v10 = vld [vmem:[#allocation20_spill] sm:$0xff] }
 0x693   :  { %1422 = vmatpush1.bf16.msra.mxu0 %v2948_v15  ;;  %1463 = vmatpush1.bf16.msra.mxu1 %v2954_v32 }
 0x694   :  { %1423 = vmatprep.subr.bf16.mxu0 %v2960_v12  ;;  %1464 = vmatprep.subr.bf16.mxu1 %v2966_v0 }
 0x697   :  { %1424 = vmatpush1.bf16.msra.mxu0 %v2972_v22  ;;  %1465 = vmatpush1.bf16.msra.mxu1 %v2978_v11 }
 0x698   :  { %1425 = vmatprep.subr.bf16.mxu0 %v2984_v30  ;;  %1466 = vmatprep.subr.bf16.mxu1 %v2990_v31  ;;  %v3177_v30 = vld [vmem:[#allocation19_spill] sm:$0xff] }
 0x69b   :  { %1426 = vmatpush1.bf16.msra.mxu0 %v2996_v35  ;;  %1467 = vmatpush1.bf16.msra.mxu1 %v3002_v36  ;;  %v3178_v36 = vld [vmem:[#allocation21_spill] sm:$0xff] }
 0x69c   :  { %1427 = vmatprep.subr.bf16.mxu0 %v3008_v37  ;;  %1468 = vmatprep.subr.bf16.mxu1 %v3014_v38 }
 0x69f   :  { %1428 = vmatpush1.bf16.msra.mxu0 %v2000_v24  ;;  %1469 = vmatpush1.bf16.msra.mxu1 %v2001_v26  ;;  %v3180_v26 = vld [vmem:[#allocation23_spill] sm:$0xff] }
 0x6a0   :  { %1429 = vmatprep.subr.bf16.mxu0 %v2002_v51  ;;  %1470 = vmatprep.subr.bf16.mxu1 %v2003_v21 }
 0x6a3   :  { %1430 = vmatpush1.bf16.msra.mxu0 %v2004_v13  ;;  %1471 = vmatpush1.bf16.msra.mxu1 %v2005_v63 }
 0x6a4   :  { %1759 = vmatprep.subr.bf16.mxu0 %v3174_v34 }
 0x746   :  { %v1338_v46 = vpop.f32.mrf.mxu0  ;;  %v1379_v40 = vpop.f32.mrf.mxu1 }
 0x747   :  { %v1386_v17 = vadd.f32 %v1338_v46, %v3175_v19  ;;  %v1388_v31 = vadd.f32 %v1379_v40, %v3177_v30 }
 0x748   :  { %v1340_v25 = vpop.f32.mrf.mxu0  ;;  %v1381_v23 = vpop.f32.mrf.mxu1 }
 0x749   :  { %v1735_v9 = vmul.f32 -1.442695, %v1386_v17  ;;  %v1387_v15 = vadd.f32 %v1340_v25, %v3176_v10  ;;  %v1737_v35 = vmul.f32 -1.442695, %v1388_v31  ;;  %v1389_v37 = vadd.f32 %v1381_v23, %v3178_v36 }
 0x74a   :  { %v1342_v32 = vpop.f32.mrf.mxu0  ;;  %v1383_v12 = vpop.f32.mrf.mxu1 }
 0x74b   :  { %1938 = vpow2.f32 %v1735_v9  ;;  %v1736_v0 = vmul.f32 -1.442695, %v1387_v15 }
 0x74c   :  { %v1343_v22 = vpop.f32.mrf.mxu0  ;;  %v1384_v11 = vpop.f32.mrf.mxu1 }
 0x74d   :  { %1940 = vpow2.f32 %v1736_v0  ;;  %v1741_v22 = vld [vmem:[%s3135_s6] ss:$0 sm:$0xff]  ;;  %s2006_s6 = scalar_lea.vmem %s1654_s3, 128 }
 0x74e   :  { %1942 = vpow2.f32 %v1737_v35  ;;  %p2007_p0 = scmp.ne.s32.totalorder %s1654_s3, %s2006_s6  ;;  %p2012_p2 = scmp.lt.s32.totalorder %s2006_s6, %s2006_s6 }
 0x74f   :  { %1944 = vtanh.f32 %v1389_v37 }
 0x750   :  { %p2013_p3 = por %p2012_p2, %p2011_p1 }
 0x752   :  { %p2014_p4 = pnand %p2013_p3, %p2007_p0 }
 0x758   :  { %v1939_v38 = vpop.eup %1938 }
 0x759   :  { %v1399_v41 = vadd.f32 1.0, %v1939_v38 }
 0x75a   :  { %v1941_v42 = vpop.eup %1940 }
 0x75b   :  { %1946 = vrcp.f32 %v1399_v41  ;;  %v1400_v43 = vadd.f32 1.0, %v1941_v42  ;;  %v1943_v44 = vpop.eup %1942 }
 0x75c   :  { %v1945_v47 = vpop.eup %1944  ;;  %v1401_v49 = vadd.f32 1.0, %v1943_v44 }
 0x75d   :  { %1948 = vrcp.f32 %v1400_v43 }
 0x75e   :  { %1950 = vrcp.f32 %v1401_v49 }
 0x768   :  { %v1947_v1 = vpop.eup %1946 }
 0x769   :  { %v1410_v48 = vmul.f32 %v1947_v1, %v1945_v47 }
 0x76a   :  { %v1949_v3 = vpop.eup %1948 }
 0x76b   :  { %v1409_v4 = vmul.f32 %v1949_v3, %v3030_v18  ;;  %v1951_v6 = vpop.eup %1950 }
 0x76d   :  { %v3083_v50 = vadd.f32 %v1410_v48, %v1409_v4 }
 0x76f   :  { %1952 = vtanh.f32 %v3083_v50 }
 0x77c   :  { %v1953_v7 = vpop.eup %1952 }
 0x77d   :  { %v1413_v53 = vmul.f32 %v1953_v7, %v1951_v6 }
 0x77f   :  { %v1414_v8 = vpack.c.bf16 %v1413_v53, %v1413_v53 }
 0x781   :  { %1448 = vmatmul.mubr.bf16.vlgmr.msra.gmra.mxu0 %v1414_v8  ;;  %1489 = vmatmul.mubr.bf16.vlgmr.msra.gmra.mxu1 %v1414_v8 }
 0x782   :  { %1760 = vmatpush3.bf16.msra.mxu0 %v1834_v28  ;;  %1775 = vmatprep.mubr.msk.bf16.mxu0 %vm2031_vm8, %v3174_v34 }
 0x783   :  { %1761 = vmatprep.subr.bf16.mxu0 %v3174_v34 }
 0x786   :  { %1762 = vmatpush3.bf16.msra.mxu0 %v1835_v54 }
 0x787   :  { %1763 = vmatprep.subr.bf16.mxu0 %v3174_v34 }
 0x78a   :  { %1764 = vmatpush3.bf16.msra.mxu0 %v1836_v29 }
 0x78b   :  { %1765 = vmatprep.subr.bf16.mxu0 %v3174_v34 }
 0x78e   :  { %1766 = vmatpush3.bf16.msra.mxu0 %v1837_v55 }
 0x78f   :  { %1767 = vmatprep.subr.bf16.mxu0 %v3174_v34 }
 0x792   :  { %1768 = vmatpush3.bf16.msra.mxu0 %v1838_v56 }
 0x793   :  { %1769 = vmatprep.subr.bf16.mxu0 %v3174_v34 }
 0x796   :  { %1770 = vmatpush3.bf16.msra.mxu0 %v1839_v59 }
 0x797   :  { %1771 = vmatprep.subr.bf16.mxu0 %v3174_v34 }
 0x79a   :  { %1772 = vmatpush3.bf16.msra.mxu0 %v1840_v60 }
 0x79b   :  { %1773 = vmatprep.subr.bf16.mxu0 %v3174_v34 }
 0x79e   :  { %1774 = vmatpush3.bf16.msra.mxu0 %v1841_v61 }
 0x841   :  { %v1449_v62 = vpop.f32.mrf.mxu0  ;;  %v1490_v52 = vpop.f32.mrf.mxu1 }
 0x842   :  { %v1497_v33 = vadd.f32 %v1449_v62, %v3179_v45  ;;  %v1499_v51 = vadd.f32 %v1490_v52, %v3180_v26 }
 0x843   :  { %v1451_v14 = vpop.f32.mrf.mxu0  ;;  %v1492_v2 = vpop.f32.mrf.mxu1 }
 0x844   :  { %v1738_v27 = vmul.f32 -1.442695, %v1497_v33  ;;  %v1498_v18 = vadd.f32 %v1451_v14, %v2680_v57  ;;  %v1740_v21 = vmul.f32 -1.442695, %v1499_v51  ;;  %v1500_v13 = vadd.f32 %v1492_v2, %v2683_v58 }
 0x845   :  { %v1453_v39 = vpop.f32.mrf.mxu0  ;;  %v1494_v5 = vpop.f32.mrf.mxu1 }
 0x846   :  { %1954 = vpow2.f32 %v1738_v27  ;;  %v1739_v16 = vmul.f32 -1.442695, %v1498_v18 }
 0x847   :  { %v1454_v20 = vpop.f32.mrf.mxu0  ;;  %v1495_v24 = vpop.f32.mrf.mxu1 }
 0x848   :  { %1956 = vpow2.f32 %v1739_v16 }
 0x849   :  { %1958 = vpow2.f32 %v1740_v21 }
 0x84a   :  { %1960 = vtanh.f32 %v1500_v13 }
 0x853   :  { %v1955_v63 = vpop.eup %1954 }
 0x854   :  { %v1510_v34 = vadd.f32 1.0, %v1955_v63 }
 0x855   :  { %v1957_v46 = vpop.eup %1956 }
 0x856   :  { %1962 = vrcp.f32 %v1510_v34  ;;  %v1511_v40 = vadd.f32 1.0, %v1957_v46  ;;  %v1959_v57 = vpop.eup %1958 }
 0x857   :  { %v1961_v19 = vpop.eup %1960  ;;  %v1512_v9 = vadd.f32 1.0, %v1959_v57 }
 0x858   :  { %1964 = vrcp.f32 %v1511_v40 }
 0x859   :  { %1966 = vrcp.f32 %v1512_v9 }
 0x863   :  { %v1963_v17 = vpop.eup %1962 }
 0x864   :  { %v1521_v25 = vmul.f32 %v1963_v17, %v1961_v19 }
 0x865   :  { %v1965_v23 = vpop.eup %1964 }
 0x866   :  { %v1520_v10 = vmul.f32 %v1965_v23, %v3083_v50  ;;  %v1967_v58 = vpop.eup %1966 }
 0x868   :  { %v1522_v15 = vadd.f32 %v1521_v25, %v1520_v10 }
 0x86a   :  { %1968 = vtanh.f32 %v1522_v15 }
 0x877   :  { %v1969_v32 = vpop.eup %1968 }
 0x878   :  { %v1524_v12 = vmul.f32 %v1969_v32, %v1967_v58 }
 0x87a   :  { %v1525_v0 = vpack.c.bf16 %v1524_v12, %v1524_v12 }
 0x87c   :  { %1776 = vmatmul.mubr.bf16.vlgmr.msra.gmra.mxu0 %v1525_v0 }
 0x93c   :  { %v1631_v11 = vpop.f32.mrf.mxu0 }
 0x93d   :  { %v1632_v30 = vadd.f32 %v1741_v22, %v1631_v11 }
 0x93e   :  { %v1777_v31 = vpop.f32.mrf.mxu0 }
 0x93f   :  { %1637 = vmax.xlane.f32.xlu0 %v1632_v30 }
 0x940   :  { %v1634_v35 = vpop.f32.mrf.mxu0 }
 0x942   :  { %v1778_v36 = vpop.f32.mrf.mxu0 }
 0x9c8   :  { %v1638_v37 = vpop.xlane.xlu0 %1637 }
 0x9c9   :  { %v1639_v38 = vsub.f32 %v1632_v30, %v1638_v37 }
 0x9cb   :  { %v1640_v41 = vmul.f32 1.442695, %v1639_v38 }
 0x9cd   :  { %1970 = vpow2.f32 %v1640_v41 }
 0x9da   :  { %v1971_v42 = vpop.eup %1970 }
 0x9db   :  { %1642 = vadd.xlane.f32.xlu1 %v1971_v42 }
 0xa64   :  { %v1643_v43 = vpop.xlane.xlu1 %1642 }
 0xa65   :  { %1972 = vrcp.f32 %v1643_v43 }
 0xa72   :  { %v1973_v44 = vpop.eup %1972 }
 0xa73   :  { %v1645_v47 = vmul.f32 %v1973_v44, %v1971_v42 }
 0xa75   :  { %1646 = vst [vmem:[#allocation2] sm:$0xff] %v1645_v47 }
 0xa76   :  { %2017 = shalt.err (!%p2014_p4)
}
 0xa77   :  { %1656 = dma.vmem_to_hbm [thread:$0]  %s1654_s3, 128, %s3136_s7, [#allocation3]  }
 0xa78   :  { %2026 = dma.done.wait [#allocation3], 128  }
 0xa79   :  { %2027 = vsyncadd [#allocation3], 4294967168 }
 0xa7a   :  { %1660 = vsyncpa [#allocation3], 1 }

</bundles_post_ra>
